<compile_context>
chip_gen: v5e
topology: v5e:2x2
jax: 0.10.0
libtpu: 0.0.40
codegen_flags: <defaults>
</compile_context>

<pallas_src>
import math

import jax
import jax.numpy as jnp
from jax.experimental import pallas as pl
from jax.experimental.pallas import tpu as pltpu

PAD = 128          # lane-dense feature width (all feature dims padded to 128)
DEFAULT_TB = 512   # batch tile; >=512 amortizes the ~0.35us per-grid-step cost


def _round_up(n, m):
    return ((n + m - 1) // m) * m


# ----------------------------------------------------------------------------
# Sequential forward, fused into one Pallas kernel.
#   layers: list of ("linear", W[in,out], b[1,out]) | ("relu",) | ("tanh",)
# ----------------------------------------------------------------------------
def sequential_forward(x, layers, *, tb=DEFAULT_TB):
    layer_kinds = tuple(l[0] for l in layers)
    linears = [l for l in layers if l[0] == "linear"]
    assert linears, "Sequential must contain at least one Linear"
    L = len(linears)
    out_dim = linears[-1][1].shape[1]

    batch, d_in = x.shape
    assert d_in <= PAD and all(
        w.shape[0] <= PAD and w.shape[1] <= PAD for _, w, _ in linears), (
        "this fused kernel assumes all feature dims <= 128")

    # ---- pack parameters: one lane-dense W operand, one bias operand -------
    w_packed = jnp.zeros((L, PAD, PAD), jnp.float32)
    b_packed = jnp.zeros((max(8, _round_up(L, 8)), PAD), jnp.float32)
    for li, (_, w, b) in enumerate(linears):
        fi, fo = w.shape
        w_packed = w_packed.at[li, :fi, :fo].set(w)
        b_packed = b_packed.at[li, :fo].set(b.reshape(-1))
    # bf16 weights feed the MXU's native path on v6e/v7x; accumulation stays
    # f32 via preferred_element_type below.
    w_packed = w_packed.astype(jnp.bfloat16)

    # ---- pad activations to a lane-dense, batch-tileable slab --------------
    bp = _round_up(batch, 8)
    tb = min(tb, bp)
    bp = _round_up(bp, tb)           # guard: no partial batch tiles
    x_pad = jnp.pad(x.astype(jnp.float32), ((0, bp - batch), (0, PAD - d_in)))
    grid = (bp // tb,)

    n_tanh = sum(1 for k in layer_kinds if k == "tanh")

    def kernel(x_ref, w_ref, b_ref, o_ref):
        h = x_ref[...]                        # already f32, (tb, 128)
        li = 0
        for kind in layer_kinds:              # unrolled at trace time
            if kind == "linear":
                # MXU: bf16 operands, f32 accumulation. Only the dot operands
                # are bf16; the running activation h stays f32 for the VPU/EUP.
                y = jnp.dot(h.astype(jnp.bfloat16), w_ref[li],
                            preferred_element_type=jnp.float32)
                h = y + b_ref[pl.ds(li, 1), :]        # f32 broadcast add (VPU)
                li += 1
            elif kind == "relu":
                h = jnp.maximum(h, 0.0)               # VPU
            elif kind == "tanh":
                h = jnp.tanh(h)                       # EUP
            else:
                raise ValueError(f"unknown layer kind: {kind}")
        o_ref[...] = h                        # lane-dense (tb, 128) store

    cost = pl.CostEstimate(
        flops=2 * bp * PAD * PAD * L,
        transcendentals=bp * PAD * n_tanh,
        bytes_accessed=(x_pad.size * 4 + bp * PAD * 4
                        + w_packed.size * 2 + b_packed.size * 4),
    )

    out_pad = pl.pallas_call(
        kernel,
        out_shape=jax.ShapeDtypeStruct((bp, PAD), jnp.float32),
        grid=grid,
        in_specs=[
            pl.BlockSpec((tb, PAD), lambda i: (i, 0)),          # x: batch tile
            pl.BlockSpec(w_packed.shape, lambda i: (0, 0, 0)),  # W: resident
            pl.BlockSpec(b_packed.shape, lambda i: (0, 0)),     # b: resident
        ],
        out_specs=pl.BlockSpec((tb, PAD), lambda i: (i, 0)),
        compiler_params=pltpu.CompilerParams(
            dimension_semantics=("parallel",)),   # megacore-shard on v7x
        cost_estimate=cost,
    )(x_pad, w_packed, b_packed)

    return out_pad[:batch, :out_dim]


# ----------------------------------------------------------------------------
# Deterministic parameter construction (mimics the mini-framework's Linear
# init: uniform(-1/sqrt(in_features), 1/sqrt(in_features))).
# ----------------------------------------------------------------------------
def make_linear(key, in_features, out_features):
    kw, kb = jax.random.split(key)
    bound = 1.0 / math.sqrt(in_features)
    # Stored as [in, out] so kernel computes x @ W + b (== PyTorch x @ W.T + b).
    w = jax.random.uniform(kw, (in_features, out_features), jnp.float32,
                           minval=-bound, maxval=bound)
    b = jax.random.uniform(kb, (1, out_features), jnp.float32,
                           minval=-bound, maxval=bound)
    return ("linear", w, b)


def reference_forward(x, layers):
    """Plain-JAX f32 reference of the Sequential forward."""
    h = x
    for layer in layers:
        if layer[0] == "linear":
            h = h @ layer[1] + layer[2]
        elif layer[0] == "relu":
            h = jnp.maximum(h, 0.0)
        elif layer[0] == "tanh":
            h = jnp.tanh(h)
    return h


if __name__ == "__main__":
    key = jax.random.PRNGKey(0)
    k_x, k1, k2, k3 = jax.random.split(key, 4)

    # batch=1024 -> two TB=512 grid steps: exercises the batch-tiled pipeline
    # and gives both v7x TensorCores work. Feature dims match the mini-MLP.
    batch, d_in, d_hid, d_out = 1024, 16, 32, 8
    x = jax.random.normal(k_x, (batch, d_in), jnp.float32)

    # Sequential(Linear, ReLU, Linear, ReLU, Linear, Tanh)
    layers = [
        make_linear(k1, d_in, d_hid),
        ("relu",),
        make_linear(k2, d_hid, d_hid),
        ("relu",),
        make_linear(k3, d_hid, d_out),
        ("tanh",),
    ]

    # TODO(synk): backward()/zero_grad()/param() are training-time utilities of
    # the container (no forward compute); only forward() is implemented here.

    out = sequential_forward(x, layers)
    out = jax.block_until_ready(out)

    ref = reference_forward(x, layers)
    assert out.shape == (batch, d_out)
    # bf16 MXU operands (f32 accumulation) -> tolerance loosened vs pure f32.
    assert jnp.allclose(out, ref, atol=2e-2, rtol=2e-2), float(
        jnp.max(jnp.abs(out - ref)))

    print("KERNEL_OK")
</pallas_src>

<mosaic_0001>
module attributes {stable_mosaic.version = 11 : i64} {
  func.func @kernel(%arg0: i32, %arg1: memref<512x128xf32, #tpu.memory_space<vmem>>, %arg2: memref<3x128x128xbf16, #tpu.memory_space<vmem>>, %arg3: memref<8x128xf32, #tpu.memory_space<vmem>>, %arg4: memref<512x128xf32, #tpu.memory_space<vmem>>) attributes {dimension_semantics = [#tpu.dimension_semantics<parallel>], iteration_bounds = array<i64: 2>, scalar_prefetch = 0 : i64, scratch_operands = 0 : i64, tpu.core_type = #tpu.core_type<tc>, window_params = [{transform_indices = @transform_0, window_bounds = array<i64: 512, 128>}, {pipeline_mode = #tpu.pipeline_mode<synchronous>, transform_indices = @transform_1, window_bounds = array<i64: 3, 128, 128>}, {pipeline_mode = #tpu.pipeline_mode<synchronous>, transform_indices = @transform_2, window_bounds = array<i64: 8, 128>}, {transform_indices = @transform_3, window_bounds = array<i64: 512, 128>}]} {
    %c0 = arith.constant 0 : index
    %c0_0 = arith.constant 0 : index
    %0 = vector.load %arg1[%c0, %c0_0] : memref<512x128xf32, #tpu.memory_space<vmem>>, vector<512x128xf32>
    %1 = arith.truncf %0 : vector<512x128xf32> to vector<512x128xbf16>
    %c0_1 = arith.constant 0 : index
    %c0_2 = arith.constant 0 : index
    %c0_3 = arith.constant 0 : index
    %2 = vector.load %arg2[%c0_1, %c0_2, %c0_3] : memref<3x128x128xbf16, #tpu.memory_space<vmem>>, vector<1x128x128xbf16>
    %3 = vector.shape_cast %2 : vector<1x128x128xbf16> to vector<128x128xbf16>
    %cst = arith.constant dense<0.000000e+00> : vector<512x128xf32>
    %4 = tpu.matmul %1, %3, %cst {dimension_numbers = #tpu.dot_dimension_numbers<[1], [0], [0], [1], [0, 0, 1, 1], [], []>} : vector<512x128xbf16>, vector<128x128xbf16>, vector<512x128xf32> -> vector<512x128xf32>
    %c0_4 = arith.constant 0 : index
    %c0_5 = arith.constant 0 : index
    %5 = vector.load %arg3[%c0_4, %c0_5] : memref<8x128xf32, #tpu.memory_space<vmem>>, vector<1x128xf32>
    %6 = vector.broadcast %5 : vector<1x128xf32> to vector<512x128xf32>
    %7 = arith.addf %4, %6 : vector<512x128xf32>
    %cst_6 = arith.constant 0.000000e+00 : f32
    %8 = vector.broadcast %cst_6 : f32 to vector<512x128xf32>
    %9 = arith.maximumf %7, %8 : vector<512x128xf32>
    %10 = arith.truncf %9 : vector<512x128xf32> to vector<512x128xbf16>
    %c1 = arith.constant 1 : index
    %c0_7 = arith.constant 0 : index
    %c0_8 = arith.constant 0 : index
    %11 = vector.load %arg2[%c1, %c0_7, %c0_8] : memref<3x128x128xbf16, #tpu.memory_space<vmem>>, vector<1x128x128xbf16>
    %12 = vector.shape_cast %11 : vector<1x128x128xbf16> to vector<128x128xbf16>
    %cst_9 = arith.constant dense<0.000000e+00> : vector<512x128xf32>
    %13 = tpu.matmul %10, %12, %cst_9 {dimension_numbers = #tpu.dot_dimension_numbers<[1], [0], [0], [1], [0, 0, 1, 1], [], []>} : vector<512x128xbf16>, vector<128x128xbf16>, vector<512x128xf32> -> vector<512x128xf32>
    %c1_10 = arith.constant 1 : index
    %c0_11 = arith.constant 0 : index
    %14 = vector.load %arg3[%c1_10, %c0_11] : memref<8x128xf32, #tpu.memory_space<vmem>>, vector<1x128xf32>
    %15 = vector.broadcast %14 : vector<1x128xf32> to vector<512x128xf32>
    %16 = arith.addf %13, %15 : vector<512x128xf32>
    %cst_12 = arith.constant 0.000000e+00 : f32
    %17 = vector.broadcast %cst_12 : f32 to vector<512x128xf32>
    %18 = arith.maximumf %16, %17 : vector<512x128xf32>
    %19 = arith.truncf %18 : vector<512x128xf32> to vector<512x128xbf16>
    %c2 = arith.constant 2 : index
    %c0_13 = arith.constant 0 : index
    %c0_14 = arith.constant 0 : index
    %20 = vector.load %arg2[%c2, %c0_13, %c0_14] : memref<3x128x128xbf16, #tpu.memory_space<vmem>>, vector<1x128x128xbf16>
    %21 = vector.shape_cast %20 : vector<1x128x128xbf16> to vector<128x128xbf16>
    %cst_15 = arith.constant dense<0.000000e+00> : vector<512x128xf32>
    %22 = tpu.matmul %19, %21, %cst_15 {dimension_numbers = #tpu.dot_dimension_numbers<[1], [0], [0], [1], [0, 0, 1, 1], [], []>} : vector<512x128xbf16>, vector<128x128xbf16>, vector<512x128xf32> -> vector<512x128xf32>
    %c2_16 = arith.constant 2 : index
    %c0_17 = arith.constant 0 : index
    %23 = vector.load %arg3[%c2_16, %c0_17] : memref<8x128xf32, #tpu.memory_space<vmem>>, vector<1x128xf32>
    %24 = vector.broadcast %23 : vector<1x128xf32> to vector<512x128xf32>
    %25 = arith.addf %22, %24 : vector<512x128xf32>
    %26 = math.tanh %25 : vector<512x128xf32>
    %c0_18 = arith.constant 0 : index
    %c0_19 = arith.constant 0 : index
    %27 = vector.load %arg4[%c0_18, %c0_19] : memref<512x128xf32, #tpu.memory_space<vmem>>, vector<512x128xf32>
    tpu.vector_store %arg4[%c0_18, %c0_19], %26 {strides = array<i32>} : memref<512x128xf32, #tpu.memory_space<vmem>>, vector<512x128xf32>,
    return
  }
  func.func @transform_0(%arg0: i32) -> (i32, i32) {
    %c0_i32 = arith.constant 0 : i32
    %c0_i32_0 = arith.constant 0 : i32
    return %arg0, %c0_i32 : i32, i32
  }
  func.func @transform_1(%arg0: i32) -> (i32, i32, i32) {
    %c0_i32 = arith.constant 0 : i32
    %c0_i32_0 = arith.constant 0 : i32
    %c0_i32_1 = arith.constant 0 : i32
    %c0_i32_2 = arith.constant 0 : i32
    return %c0_i32, %c0_i32_0, %c0_i32_1 : i32, i32, i32
  }
  func.func @transform_2(%arg0: i32) -> (i32, i32) {
    %c0_i32 = arith.constant 0 : i32
    %c0_i32_0 = arith.constant 0 : i32
    %c0_i32_1 = arith.constant 0 : i32
    return %c0_i32, %c0_i32_0 : i32, i32
  }
  func.func @transform_3(%arg0: i32) -> (i32, i32) {
    %c0_i32 = arith.constant 0 : i32
    %c0_i32_0 = arith.constant 0 : i32
    return %arg0, %c0_i32 : i32, i32
  }
}

</mosaic_0001>

<bundles_post_ra>
// kernel: tpu_custom_call.1
= control target key start
LH: loop header
LB: loop body
LE: loop exit
PB: predicated region body
PF: predicated region fallthrough
CT: control target
= control target key end

     0   :  { %8 = vsyncpa [#allocation3], 0  ;;  %s2479_s0 = inlined_call_operand.hbm [shape: f32[1024,128], index: 0, kind: input, shape index: {}]   ;;  %s2480_s1 = inlined_call_operand.hbm [shape: bf16[3,128,128], index: 1, kind: input, shape index: {}]   ;;  %s2481_s2 = inlined_call_operand.hbm [shape: f32[8,128], index: 2, kind: input, shape index: {}]   ;;  %s2482_s3 = inlined_call_operand.hbm [shape: f32[1024,128], index: 3, kind: output, shape index: {}]  }
   0x1   :  { %10 = vsyncpa [#allocation3 + $0x1], 0 }
   0x2   :  { %11 = vsyncpa [#allocation6], 0 }
   0x3   :  { %12 = vsyncpa [#allocation4], 0 }
   0x4   :  { %14 = vsyncpa [#allocation4 + $0x1], 0  ;;  %s2016_s12 = smov 0   ;;  %s2018_s13 = smov 0  }
   0x5   :  { %s2020_s14 = smov 0   ;;  %s2022_s15 = smov 0  }
   0x6 LB: > { %s2037_s16 = sadd.s32 4294967295, %s1986_s15   ;;  %s1455_s17 = sadd.s32 4294967294, %s1986_s15   ;;  %s1986_s15 = sphi %s2022_s15, %s2492_s15   ;;  %s1982_s14 = sphi %s2020_s14, %s2491_s14   ;;  %s1978_s13 = sphi %s2018_s13, %s2490_s13   ;;  %s1974_s12 = sphi %s2016_s12, %s2489_s12  }
   0x7   : > { %p40_p0 = scmp.ne.s32.totalorder %s1978_s13, %s1974_s12  ;;  %p41_p1 = scmp.eq.s32.totalorder %s2037_s16, 0 }
   0x8   : > { %p106_p2 = scmp.eq.s32.totalorder %s2037_s16, 1  ;;  %p112_p3 = scmp.eq.s32.totalorder %s1455_s17, 1 }
   0x9   : > { %p2046_p4 = por %p41_p1, %p40_p0  ;;  %p1456_p5 = scmp.ge.s32.totalorder %s1986_s15, 1 }
   0xa   : > { %p2051_p6 = por %p112_p3, %p40_p0  ;;  %p119_p7 = scmp.lt.s32.totalorder %s1986_s15, 3 }
   0xb   : > { %s130_s22 = sshll.u32 %s2480_s1, 4  ;;  %s1988_s24 = smov [#allocation5]   ;;  %s131_s22 = int_to_ptr.hbm [resolvable:$true] %s130_s22 }
   0xc   : > { %p2059_p8 = pnand %p1456_p5, %p119_p7  ;;  %s132_s25 = sshll.u32 %s1988_s24, 4  ;;  %s133_s25 = int_to_ptr.vmem [resolvable:$true] %s132_s25 }
   0xd   : > { %s145_s28 = sshll.u32 %s2481_s2, 4  ;;  %s1989_s29 = smov 64   ;;  %s146_s28 = int_to_ptr.hbm [resolvable:$true] %s145_s28 }
   0xe   : > { %p1631_p9 = pneg %p2059_p8  ;;  %s1990_s30 = smov 4  }
   0xf   : > { %s1991_s4 = smov [#allocation7]   ;;  %s2072_s6 = sadd.s32 1, %s1986_s15  }
  0x10   : > { %p1632_p10 = pnand %p1631_p9, %p41_p1  ;;  %s147_s5 = sshll.u32 %s1991_s4, 4  ;;  %s148_s5 = int_to_ptr.vmem [resolvable:$true] %s147_s5 }
  0x11   : > { %s27_s7 = sadd.s32 1, %s1982_s14  ;;  %s24_s8 = ssub.s32 %s1986_s15, %s2072_s6 }
  0x12   : > { %1634 = dma.hbm_to_vmem [thread:$0]  (!%p1632_p10), %s131_s22, 3072, %s133_s25, [#allocation6], %s1989_s29, %s1989_s29, %s1990_s30  }
  0x13   : > { %1637 = dma.hbm_to_vmem [thread:$0]  (!%p1632_p10), %s146_s28, 128, %s148_s5, [#allocation6]  }
  0x14   : > { %p34_p12 = scmp.ne.s32.totalorder %s1982_s14, %s1978_s13  ;;  %p25_p13 = scmp.eq.s32.totalorder %s24_s8, 0 }
  0x15   : > { %p35_p0 = scmp.eq.s32.totalorder %s1986_s15, 0  ;;  %p1648_p5 = scmp.lt.s32.totalorder %s1986_s15, 2 }
  0x16   : > { %p2082_p3 = por %p106_p2, %p34_p12  ;;  %s158_s11 = sand.u32 1, %s1982_s14  }
  0x17   : > { %s2088_s10 = scalar_select %p25_p13, %s1982_s14, %s27_s7  }
  0x18   : > { %p36_p7 = por %p35_p0, %p34_p12  ;;  %s1460_s17 = sshll.u32 %s158_s11, 9 }
  0x19   : > { %s1569_s20 = sshll.u32 %s1986_s15, 9  ;;  %s162_s25 = scalar_lea.vmem [#allocation2], %s1460_s17 }
  0x1a   : > { %s167_s24 = scalar_lea.hbm %s2479_s0, %s1569_s20  ;;  %s170_s26 = sshll.u32 %s162_s25, 4  ;;  %s171_s26 = int_to_ptr.vmem [resolvable:$true] %s170_s26 }
  0x1b   : > { %s168_s27 = sshll.u32 %s167_s24, 4  ;;  %p2095_p2 = pnand %p1648_p5, %p36_p7  ;;  %s169_s27 = int_to_ptr.hbm [resolvable:$true] %s168_s27 }
  0x1c   : > { %s159_s29 = scalar_lea.sflag [#allocation3], %s158_s11  ;;  %s1886_s30 = sshra.s32 %s169_s27, 4  ;;  %s1887_s30 = int_to_ptr.hbm [resolvable:$true] %s1886_s30 }
  0x1d   : > { %s1888_s4 = scalar_lea.hbm %s1887_s30, 512  ;;  %p1890_p10 = pneg %p2095_p2 }
  0x1e   : > { %p1889_p9 = scmp.ne.s32.totalorder %s1887_s30, %s1888_s4  ;;  %s1893_s8 = scalar_lea.hbm %s2479_s0, 1024 }
  0x1f   : > { %p1894_p0 = scmp.lt.s32.totalorder %s1887_s30, %s2479_s0  ;;  %p1895_p5 = scmp.lt.s32.totalorder %s1893_s8, %s1888_s4 }
  0x20   : > { %p1891_p12 = pnand %p1890_p10, %p1889_p9 }
  0x21   : > { %p1896_p7 = por %p1895_p5, %p1894_p0 }
  0x22   : > { %p1892_p13 = pneg %p1891_p12 }
  0x24   : > { %p1897_p11 = pnand %p1896_p7, %p1892_p13 }
  0x26   : > { %1900 = shalt.err (!%p1897_p11)
}
  0x27   : > { %s1992_s11 = smov 128   ;;  %s1993_s21 = smov 8  }
  0x28   : > { %1641 = dma.hbm_to_vmem [thread:$0]  (!%p2095_p2), %s169_s27, 8192, %s171_s26, %s159_s29, %s1992_s11, %s1992_s11, %s1993_s21  }
  0x29   : > { %182 = sbr.rel (%p2059_p8) target bundleno = 882 (0x372), region = 32  ;;  %s2112_s22 = sand.u32 (!%p2059_p8), 1, %s1978_s13  }
  0x2a   : > { %s1464_s24 = sshll.u32 (!%p2059_p8), %s2112_s22, 9  ;;  %s185_s25 = scalar_lea.sflag (!%p2059_p8), [#allocation3], %s2112_s22 }
  0x2b   : > { %s2118_s30 = scalar_lea.vmem (!%p2059_p8), [#allocation2], %s1464_s24 }
  0x2e   : > { %1961 = dma.done.wait (%p2046_p4), %s185_s25, 8192  }
  0x2f   : > { %1963 = vsyncadd (%p2046_p4), %s185_s25, 4294959104 }
  0x30   : > { %1965 = dma.done.wait (%p41_p1), [#allocation6], 3200  }
  0x31   : > { %1967 = vsyncadd (%p41_p1), [#allocation6], 4294964096  ;;  %v1577_v0 = vld [vmem:[#allocation5 + $0x38] sm:$0xff]  ;;  %v1576_v1 = vld [vmem:[#allocation5 + $0x30] sm:$0xff]  ;;  %s2271_s18 = scalar_lea.vmem [#allocation8], %s1464_s24  ;;  %s1594_s23 = sshll.u32 %s2037_s16, 9 }
  0x32   : > { %386 = vmatpush.bf16.msra.mxu0 %v1577_v0  ;;  %1595 = vmatpush.bf16.msra.mxu3 %v1577_v0  ;;  %v1575_v2 = vld [vmem:[#allocation5 + $0x28] sm:$0xff]  ;;  %v1574_v3 = vld [vmem:[#allocation5 + $0x20] sm:$0xff]  ;;  %v1573_v4 = vld [vmem:[#allocation5 + $0x18] sm:$0xff]  ;;  %s1359_s28 = scalar_lea.hbm %s2482_s3, %s1594_s23  ;;  %s1360_s29 = sshll.u32 %s2271_s18, 4  ;;  %s1361_s29 = int_to_ptr.vmem [resolvable:$true] %s1360_s29 }
  0x33   : > { %v1572_v5 = vld [vmem:[#allocation5 + $0x10] sm:$0xff]  ;;  %v1571_v6 = vld [vmem:[#allocation5 + $0x8] sm:$0xff]  ;;  %v1570_v7 = vld [vmem:[#allocation5] sm:$0xff]  ;;  %s1362_s4 = sshll.u32 %s1359_s28, 4  ;;  %s1348_s5 = scalar_lea.sflag [#allocation4], %s2112_s22  ;;  %s1363_s4 = int_to_ptr.hbm [resolvable:$true] %s1362_s4 }
  0x34   : > { %v224_v8 = vld [vmem:[%s2118_s30] sm:$0xff]  ;;  %v225_v9 = vld [vmem:[%s2118_s30 + $0x8] sm:$0xff]  ;;  %v226_v11 = vld [vmem:[%s2118_s30 + $0x10] sm:$0xff]  ;;  %s1930_s7 = sshra.s32 %s1363_s4, 4  ;;  %s1936_s20 = scalar_lea.hbm %s2482_s3, 1024  ;;  %s1931_s7 = int_to_ptr.hbm [resolvable:$true] %s1930_s7 }
  0x35   : > { %v288_v10 = vpack.c.bf16 %v225_v9, %v224_v8  ;;  %v227_v12 = vld [vmem:[%s2118_s30 + $0x18] sm:$0xff]  ;;  %v228_v14 = vld [vmem:[%s2118_s30 + $0x20] sm:$0xff]  ;;  %v229_v15 = vld [vmem:[%s2118_s30 + $0x28] sm:$0xff]  ;;  %s1932_s16 = scalar_lea.hbm %s1931_s7, 512  ;;  %p1937_p11 = scmp.lt.s32.totalorder %s1931_s7, %s2482_s3 }
  0x36   : > { %387 = vmatpush.bf16.msra.mxu0 %v1576_v1  ;;  %1596 = vmatpush.bf16.msra.mxu3 %v1576_v1  ;;  %v289_v13 = vpack.c.bf16 %v227_v12, %v226_v11  ;;  %v290_v16 = vpack.c.bf16 %v229_v15, %v228_v14  ;;  %v230_v17 = vld [vmem:[%s2118_s30 + $0x30] sm:$0xff]  ;;  %v231_v18 = vld [vmem:[%s2118_s30 + $0x38] sm:$0xff]  ;;  %v232_v20 = vld [vmem:[%s2118_s30 + $0x40] sm:$0xff]  ;;  %p1933_p1 = scmp.ne.s32.totalorder %s1931_s7, %s1932_s16  ;;  %p1938_p2 = scmp.lt.s32.totalorder %s1936_s20, %s1932_s16 }
  0x37   : > { %v291_v19 = vpack.c.bf16 %v231_v18, %v230_v17  ;;  %v233_v21 = vld [vmem:[%s2118_s30 + $0x48] sm:$0xff]  ;;  %v1585_v23 = vld [vmem:[#allocation5 + $0x78] sm:$0xff]  ;;  %v234_v24 = vld [vmem:[%s2118_s30 + $0x50] sm:$0xff] }
  0x38   : > { %v292_v22 = vpack.c.bf16 %v233_v21, %v232_v20  ;;  %718 = vmatpush.bf16.msra.mxu1 %v1585_v23  ;;  %v235_v25 = vld [vmem:[%s2118_s30 + $0x58] sm:$0xff]  ;;  %v1584_v27 = vld [vmem:[#allocation5 + $0x70] sm:$0xff]  ;;  %v1583_v28 = vld [vmem:[#allocation5 + $0x68] sm:$0xff]  ;;  %p1934_p4 = pnand %p1933_p1, %p2082_p3  ;;  %p1939_p9 = por %p1938_p2, %p1937_p11 }
  0x39   : > { %v293_v26 = vpack.c.bf16 %v235_v25, %v234_v24  ;;  %v1582_v29 = vld [vmem:[#allocation5 + $0x60] sm:$0xff]  ;;  %v237_v31 = vld [vmem:[%s2118_s30 + $0x68] sm:$0xff]  ;;  %v1581_v32 = vld [vmem:[#allocation5 + $0x58] sm:$0xff] }
  0x3a   : > { %388 = vmatpush.bf16.msra.mxu0 %v1575_v2  ;;  %1597 = vmatpush.bf16.msra.mxu3 %v1575_v2  ;;  %v236_v30 = vld [vmem:[%s2118_s30 + $0x60] sm:$0xff]  ;;  %v1580_v34 = vld [vmem:[#allocation5 + $0x50] sm:$0xff]  ;;  %v1579_v35 = vld [vmem:[#allocation5 + $0x48] sm:$0xff]  ;;  %p1935_p8 = pneg %p1934_p4 }
  0x3b   : > { %v294_v33 = vpack.c.bf16 %v237_v31, %v236_v30  ;;  %v1578_v36 = vld [vmem:[#allocation5 + $0x40] sm:$0xff]  ;;  %v238_v37 = vld [vmem:[%s2118_s30 + $0x70] sm:$0xff]  ;;  %v239_v38 = vld [vmem:[%s2118_s30 + $0x78] sm:$0xff] }
  0x3c   : > { %719 = vmatpush.bf16.msra.mxu1 %v1584_v27  ;;  %v295_v39 = vpack.c.bf16 %v239_v38, %v238_v37  ;;  %v240_v40 = vld [vmem:[%s2118_s30 + $0x80] sm:$0xff]  ;;  %v241_v41 = vld [vmem:[%s2118_s30 + $0x88] sm:$0xff]  ;;  %v242_v50 = vld [vmem:[%s2118_s30 + $0x90] sm:$0xff]  ;;  %p1940_p10 = pnand %p1939_p9, %p1935_p8 }
  0x3d   : > { %v296_v42 = vpack.c.bf16 %v241_v41, %v240_v40  ;;  %v2146_v44 = vld [vmem:[#allocation7] ss:$0 sm:$0xff]  ;;  %v243_v51 = vld [vmem:[%s2118_s30 + $0x98] sm:$0xff]  ;;  %v245_v61 = vld [vmem:[%s2118_s30 + $0xa8] sm:$0xff] }
  0x3e   : > { %389 = vmatpush.bf16.msra.mxu0 %v1574_v3  ;;  %1598 = vmatpush.bf16.msra.mxu3 %v1574_v3  ;;  %v297_v53 = vpack.c.bf16 %v243_v51, %v242_v50  ;;  %v244_v60 = vld [vmem:[%s2118_s30 + $0xa0] sm:$0xff]  ;;  %v273_v17 = vld [vmem:[%s2118_s30 + $0x188] sm:$0xff]  ;;  %v275_v30 = vld [vmem:[%s2118_s30 + $0x198] sm:$0xff] }
  0x3f   : > { %v298_v63 = vpack.c.bf16 %v245_v61, %v244_v60  ;;  %v248_v18 = vld [vmem:[%s2118_s30 + $0xc0] sm:$0xff]  ;;  %v250_v31 = vld [vmem:[%s2118_s30 + $0xd0] sm:$0xff]  ;;  %v1593_v40 = vld [vmem:[#allocation5 + $0xb8] sm:$0xff] }
  0x40   : > { %720 = vmatpush.bf16.msra.mxu1 %v1583_v28  ;;  %1050 = vmatpush.bf16.msra.mxu2 %v1593_v40  ;;  %v1592_v50 = vld [vmem:[#allocation5 + $0xb0] sm:$0xff] }
  0x41   : > { %v254_v61 = vld [vmem:[%s2118_s30 + $0xf0] sm:$0xff] }
  0x42   : > { %390 = vmatpush.bf16.msra.mxu0 %v1573_v4  ;;  %1599 = vmatpush.bf16.msra.mxu3 %v1573_v4 }
  0x44   : > { %721 = vmatpush.bf16.msra.mxu1 %v1582_v29  ;;  %1051 = vmatpush.bf16.msra.mxu2 %v1592_v50 }
  0x46   : > { %391 = vmatpush.bf16.msra.mxu0 %v1572_v5  ;;  %1600 = vmatpush.bf16.msra.mxu3 %v1572_v5 }
  0x48   : > { %722 = vmatpush.bf16.msra.mxu1 %v1581_v32 }
  0x4a   : > { %392 = vmatpush.bf16.msra.mxu0 %v1571_v6  ;;  %1601 = vmatpush.bf16.msra.mxu3 %v1571_v6  ;;  %v246_v6 = vld [vmem:[%s2118_s30 + $0xb0] sm:$0xff] }
  0x4c   : > { %723 = vmatpush.bf16.msra.mxu1 %v1580_v34 }
  0x4e   : > { %393 = vmatpush.bf16.msra.mxu0 %v1570_v7  ;;  %1602 = vmatpush.bf16.msra.mxu3 %v1570_v7  ;;  %v247_v7 = vld [vmem:[%s2118_s30 + $0xb8] sm:$0xff] }
  0x4f   : > { %v299_v9 = vpack.c.bf16 %v247_v7, %v246_v6  ;;  %v1587_v6 = vld [vmem:[#allocation5 + $0x88] sm:$0xff]  ;;  %v1586_v7 = vld [vmem:[#allocation5 + $0x80] sm:$0xff] }
  0x50   : > { %724 = vmatpush.bf16.msra.mxu1 %v1579_v35 }
  0x51   : > { %394 = vmatmul.bf16.vlgmr.msra.gmra.mxu0 %v288_v10 }
  0x52   : > { %1603 = vmatpush.bf16.msrb.mxu3 %v1585_v23 }
  0x54   : > { %725 = vmatpush.bf16.msra.mxu1 %v1578_v36 }
  0x56   : > { %1604 = vmatpush.bf16.msrb.mxu3 %v1584_v27 }
  0x5a   : > { %1605 = vmatpush.bf16.msrb.mxu3 %v1583_v28 }
  0x5e   : > { %1606 = vmatpush.bf16.msrb.mxu3 %v1582_v29  ;;  %v274_v29 = vld [vmem:[%s2118_s30 + $0x190] sm:$0xff] }
  0x61   : > { %399 = vmatmul.bf16.gmra.mxu0 %v289_v13 }
  0x62   : > { %1607 = vmatpush.bf16.msrb.mxu3 %v1581_v32  ;;  %v251_v32 = vld [vmem:[%s2118_s30 + $0xd8] sm:$0xff] }
  0x66   : > { %1608 = vmatpush.bf16.msrb.mxu3 %v1580_v34 }
  0x6a   : > { %1609 = vmatpush.bf16.msrb.mxu3 %v1579_v35  ;;  %v301_v35 = vpack.c.bf16 %v251_v32, %v250_v31 }
  0x6e   : > { %1610 = vmatpush.bf16.msrb.mxu3 %v1578_v36 }
  0x71   : > { %404 = vmatmul.bf16.gmra.mxu0 %v290_v16  ;;  %v272_v16 = vld [vmem:[%s2118_s30 + $0x180] sm:$0xff] }
  0x72   : > { %v312_v20 = vpack.c.bf16 %v273_v17, %v272_v16  ;;  %v281_v16 = vld [vmem:[%s2118_s30 + $0x1c8] sm:$0xff] }
  0x74   : > { %514 = vmatmul.bf16.vlgmr.msra.gmra.mxu3 %v312_v20 }
  0x75   : > { %1611 = vmatpush.bf16.msra.mxu3 %v1593_v40 }
  0x79   : > { %1612 = vmatpush.bf16.msra.mxu3 %v1592_v50  ;;  %v261_v50 = vld [vmem:[%s2118_s30 + $0x128] sm:$0xff] }
  0x81   : > { %409 = vmatmul.bf16.gmra.mxu0 %v291_v19  ;;  %v249_v19 = vld [vmem:[%s2118_s30 + $0xc8] sm:$0xff] }
  0x91   : > { %414 = vmatmul.bf16.gmra.mxu0 %v292_v22  ;;  %v300_v22 = vpack.c.bf16 %v249_v19, %v248_v18 }
  0xa1   : > { %419 = vmatmul.bf16.gmra.mxu0 %v293_v26 }
  0xb1   : > { %424 = vmatmul.bf16.gmra.mxu0 %v294_v33  ;;  %v313_v33 = vpack.c.bf16 %v275_v30, %v274_v29  ;;  %v282_v29 = vld [vmem:[%s2118_s30 + $0x1d0] sm:$0xff]  ;;  %v283_v30 = vld [vmem:[%s2118_s30 + $0x1d8] sm:$0xff] }
  0xb2   : > { %v317_v32 = vpack.c.bf16 %v283_v30, %v282_v29 }
  0xb3   : > { %519 = vmatmul.bf16.gmra.mxu3 %v313_v33  ;;  %v2196_v33 = vld [vmem:[#allocation7 + $0x1] ss:$0 sm:$0xff] }
  0xc1   : > { %429 = vmatmul.bf16.gmra.mxu0 %v295_v39 }
  0xce   : > { %v395_v43 = vpop.f32.mrf.mxu0 }
  0xcf   : > { %v396_v45 = vadd.f32 %v2146_v44, %v395_v43  ;;  %v276_v43 = vld [vmem:[%s2118_s30 + $0x1a0] sm:$0xff] }
  0xd1   : > { %434 = vmatmul.bf16.gmra.mxu0 %v296_v42  ;;  %v555_v48 = vmax.f32 %v396_v45, 0.0  ;;  %v277_v45 = vld [vmem:[%s2118_s30 + $0x1a8] sm:$0xff] }
  0xd6   : > { %v397_v46 = vpop.f32.mrf.mxu0 }
  0xd7   : > { %v398_v47 = vadd.f32 %v2146_v44, %v397_v46  ;;  %v252_v46 = vld [vmem:[%s2118_s30 + $0xe0] sm:$0xff] }
  0xd9   : > { %v556_v49 = vmax.f32 %v398_v47, 0.0  ;;  %v253_v47 = vld [vmem:[%s2118_s30 + $0xe8] sm:$0xff] }
  0xda   : > { %v302_v51 = vpack.c.bf16 %v253_v47, %v252_v46 }
  0xdb   : > { %v619_v52 = vpack.c.bf16 %v556_v49, %v555_v48  ;;  %v314_v48 = vpack.c.bf16 %v277_v45, %v276_v43 }
  0xdd   : > { %726 = vmatmul.bf16.vlgmr.msra.gmra.mxu1 %v619_v52  ;;  %524 = vmatmul.bf16.gmra.mxu3 %v314_v48  ;;  %v260_v48 = vld [vmem:[%s2118_s30 + $0x120] sm:$0xff] }
  0xde   : > { %v400_v54 = vpop.f32.mrf.mxu0 }
  0xdf   : > { %v401_v55 = vadd.f32 %v2146_v44, %v400_v54  ;;  %v1590_v54 = vld [vmem:[#allocation5 + $0xa0] sm:$0xff] }
  0xe1   : > { %439 = vmatmul.bf16.gmra.mxu0 %v297_v53  ;;  %v557_v58 = vmax.f32 %v401_v55, 0.0  ;;  %v1591_v53 = vld [vmem:[#allocation5 + $0xa8] sm:$0xff] }
  0xe2   : > { %1052 = vmatpush.bf16.msra.mxu2 %v1591_v53  ;;  %1613 = vmatpush.bf16.msra.mxu3 %v1591_v53 }
  0xe6   : > { %v402_v56 = vpop.f32.mrf.mxu0  ;;  %1053 = vmatpush.bf16.msra.mxu2 %v1590_v54  ;;  %1614 = vmatpush.bf16.msra.mxu3 %v1590_v54 }
  0xe7   : > { %v403_v57 = vadd.f32 %v2146_v44, %v402_v56 }
  0xe9   : > { %v558_v59 = vmax.f32 %v403_v57, 0.0 }
  0xeb   : > { %v620_v62 = vpack.c.bf16 %v558_v59, %v557_v58  ;;  %v1589_v58 = vld [vmem:[#allocation5 + $0x98] sm:$0xff] }
  0xec   : > { %1054 = vmatpush.bf16.msra.mxu2 %v1589_v58  ;;  %1615 = vmatpush.bf16.msra.mxu3 %v1589_v58 }
  0xed   : > { %731 = vmatmul.bf16.gmra.mxu1 %v620_v62  ;;  %v255_v62 = vld [vmem:[%s2118_s30 + $0xf8] sm:$0xff] }
  0xee   : > { %v405_v0 = vpop.f32.mrf.mxu0 }
  0xef   : > { %v406_v1 = vadd.f32 %v2146_v44, %v405_v0  ;;  %v279_v0 = vld [vmem:[%s2118_s30 + $0x1b8] sm:$0xff] }
  0xf1   : > { %444 = vmatmul.bf16.gmra.mxu0 %v298_v63  ;;  %v559_v4 = vmax.f32 %v406_v1, 0.0  ;;  %v278_v63 = vld [vmem:[%s2118_s30 + $0x1b0] sm:$0xff] }
  0xf6   : > { %v407_v2 = vpop.f32.mrf.mxu0 }
  0xf7   : > { %v408_v3 = vadd.f32 %v2146_v44, %v407_v2  ;;  %v315_v2 = vpack.c.bf16 %v279_v0, %v278_v63  ;;  %v515_v30 = vpop.f32.mrf.mxu3 }
  0xf9   : > { %v560_v5 = vmax.f32 %v408_v3, 0.0  ;;  %v1588_v3 = vld [vmem:[#allocation5 + $0x90] sm:$0xff]  ;;  %529 = vmatmul.bf16.gmra.mxu3 %v315_v2 }
  0xfa   : > { %1055 = vmatpush.bf16.msra.mxu2 %v1588_v3  ;;  %1616 = vmatpush.bf16.msra.mxu3 %v1588_v3 }
  0xfb   : > { %v621_v8 = vpack.c.bf16 %v560_v5, %v559_v4  ;;  %v303_v4 = vpack.c.bf16 %v255_v62, %v254_v61 }
  0xfd   : > { %736 = vmatmul.bf16.gmra.mxu1 %v621_v8 }
  0xfe   : > { %v410_v10 = vpop.f32.mrf.mxu0  ;;  %1056 = vmatpush.bf16.msra.mxu2 %v1587_v6  ;;  %1617 = vmatpush.bf16.msra.mxu3 %v1587_v6  ;;  %v263_v6 = vld [vmem:[%s2118_s30 + $0x138] sm:$0xff] }
  0xff   : > { %v411_v11 = vadd.f32 %v2146_v44, %v410_v10 }
 0x101   : > { %449 = vmatmul.bf16.gmra.mxu0 %v299_v9  ;;  %v561_v14 = vmax.f32 %v411_v11, 0.0 }
 0x102   : > { %1057 = vmatpush.bf16.msra.mxu2 %v1586_v7  ;;  %1618 = vmatpush.bf16.msra.mxu3 %v1586_v7  ;;  %v286_v7 = vld [vmem:[%s2118_s30 + $0x1f0] sm:$0xff] }
 0x106   : > { %v412_v12 = vpop.f32.mrf.mxu0 }
 0x107   : > { %v413_v13 = vadd.f32 %v2146_v44, %v412_v12 }
 0x109   : > { %v562_v15 = vmax.f32 %v413_v13, 0.0  ;;  %v256_v13 = vld [vmem:[%s2118_s30 + $0x100] sm:$0xff] }
 0x10b   : > { %v622_v21 = vpack.c.bf16 %v562_v15, %v561_v14  ;;  %v257_v14 = vld [vmem:[%s2118_s30 + $0x108] sm:$0xff]  ;;  %v280_v15 = vld [vmem:[%s2118_s30 + $0x1c0] sm:$0xff] }
 0x10c   : > { %v316_v18 = vpack.c.bf16 %v281_v16, %v280_v15  ;;  %v304_v19 = vpack.c.bf16 %v257_v14, %v256_v13 }
 0x10d   : > { %741 = vmatmul.bf16.gmra.mxu1 %v622_v21 }
 0x10e   : > { %v415_v23 = vpop.f32.mrf.mxu0  ;;  %534 = vmatmul.bf16.gmra.mxu3 %v316_v18 }
 0x10f   : > { %v416_v24 = vadd.f32 %v2146_v44, %v415_v23 }
 0x111   : > { %454 = vmatmul.bf16.gmra.mxu0 %v300_v22  ;;  %v563_v27 = vmax.f32 %v416_v24, 0.0 }
 0x116   : > { %v417_v25 = vpop.f32.mrf.mxu0 }
 0x117   : > { %v418_v26 = vadd.f32 %v2146_v44, %v417_v25 }
 0x119   : > { %v564_v28 = vmax.f32 %v418_v26, 0.0  ;;  %v258_v26 = vld [vmem:[%s2118_s30 + $0x110] sm:$0xff] }
 0x11b   : > { %v623_v34 = vpack.c.bf16 %v564_v28, %v563_v27  ;;  %v259_v28 = vld [vmem:[%s2118_s30 + $0x118] sm:$0xff] }
 0x11d   : > { %746 = vmatmul.bf16.gmra.mxu1 %v623_v34  ;;  %v305_v34 = vpack.c.bf16 %v259_v28, %v258_v26  ;;  %v265_v26 = vld [vmem:[%s2118_s30 + $0x148] sm:$0xff] }
 0x11e   : > { %v420_v36 = vpop.f32.mrf.mxu0  ;;  %539 = vmatmul.bf16.gmra.mxu3 %v317_v32 }
 0x11f   : > { %v421_v37 = vadd.f32 %v2146_v44, %v420_v36 }
 0x121   : > { %459 = vmatmul.bf16.gmra.mxu0 %v301_v35  ;;  %v565_v41 = vmax.f32 %v421_v37, 0.0 }
 0x126   : > { %v422_v38 = vpop.f32.mrf.mxu0 }
 0x127   : > { %v423_v39 = vadd.f32 %v2146_v44, %v422_v38 }
 0x129   : > { %v566_v42 = vmax.f32 %v423_v39, 0.0 }
 0x12b   : > { %v624_v49 = vpack.c.bf16 %v566_v42, %v565_v41 }
 0x12d   : > { %751 = vmatmul.bf16.gmra.mxu1 %v624_v49 }
 0x12e   : > { %v425_v52 = vpop.f32.mrf.mxu0 }
 0x12f   : > { %v426_v55 = vadd.f32 %v2146_v44, %v425_v52  ;;  %v285_v52 = vld [vmem:[%s2118_s30 + $0x1e8] sm:$0xff] }
 0x131   : > { %464 = vmatmul.bf16.gmra.mxu0 %v302_v51  ;;  %v567_v59 = vmax.f32 %v426_v55, 0.0  ;;  %v284_v51 = vld [vmem:[%s2118_s30 + $0x1e0] sm:$0xff]  ;;  %v306_v55 = vpack.c.bf16 %v261_v50, %v260_v48  ;;  %v267_v50 = vld [vmem:[%s2118_s30 + $0x158] sm:$0xff] }
 0x132   : > { %v318_v54 = vpack.c.bf16 %v285_v52, %v284_v51 }
 0x134   : > { %544 = vmatmul.bf16.gmra.mxu3 %v318_v54 }
 0x136   : > { %v427_v56 = vpop.f32.mrf.mxu0 }
 0x137   : > { %v428_v57 = vadd.f32 %v2146_v44, %v427_v56 }
 0x139   : > { %v568_v60 = vmax.f32 %v428_v57, 0.0 }
 0x13b   : > { %v625_v1 = vpack.c.bf16 %v568_v60, %v567_v59 }
 0x13d   : > { %756 = vmatmul.bf16.gmra.mxu1 %v625_v1 }
 0x13e   : > { %v430_v5 = vpop.f32.mrf.mxu0 }
 0x13f   : > { %v431_v8 = vadd.f32 %v2146_v44, %v430_v5 }
 0x141   : > { %469 = vmatmul.bf16.gmra.mxu0 %v303_v4  ;;  %v569_v11 = vmax.f32 %v431_v8, 0.0  ;;  %v262_v4 = vld [vmem:[%s2118_s30 + $0x130] sm:$0xff]  ;;  %v287_v8 = vld [vmem:[%s2118_s30 + $0x1f8] sm:$0xff] }
 0x146   : > { %v432_v9 = vpop.f32.mrf.mxu0 }
 0x147   : > { %v433_v10 = vadd.f32 %v2146_v44, %v432_v9 }
 0x149   : > { %v570_v12 = vmax.f32 %v433_v10, 0.0  ;;  %v319_v10 = vpack.c.bf16 %v287_v8, %v286_v7 }
 0x14b   : > { %v626_v17 = vpack.c.bf16 %v570_v12, %v569_v11  ;;  %v307_v11 = vpack.c.bf16 %v263_v6, %v262_v4  ;;  %549 = vmatmul.bf16.gmra.mxu3 %v319_v10  ;;  %v269_v10 = vld [vmem:[%s2118_s30 + $0x168] sm:$0xff] }
 0x14d   : > { %761 = vmatmul.bf16.gmra.mxu1 %v626_v17 }
 0x14e   : > { %v435_v20 = vpop.f32.mrf.mxu0 }
 0x14f   : > { %v436_v21 = vadd.f32 %v2146_v44, %v435_v20 }
 0x151   : > { %474 = vmatmul.bf16.gmra.mxu0 %v304_v19  ;;  %v571_v24 = vmax.f32 %v436_v21, 0.0 }
 0x156   : > { %v437_v22 = vpop.f32.mrf.mxu0 }
 0x157   : > { %v438_v23 = vadd.f32 %v2146_v44, %v437_v22 }
 0x159   : > { %v572_v25 = vmax.f32 %v438_v23, 0.0 }
 0x15a   : > { %v727_v27 = vpop.f32.mrf.mxu1 }
 0x15b   : > { %v627_v31 = vpack.c.bf16 %v572_v25, %v571_v24  ;;  %v728_v36 = vadd.f32 %v2196_v33, %v727_v27  ;;  %v264_v25 = vld [vmem:[%s2118_s30 + $0x140] sm:$0xff] }
 0x15c   : > { %v308_v28 = vpack.c.bf16 %v265_v26, %v264_v25 }
 0x15d   : > { %766 = vmatmul.bf16.gmra.mxu1 %v627_v31  ;;  %v887_v39 = vmax.f32 %v728_v36, 0.0 }
 0x15e   : > { %v440_v35 = vpop.f32.mrf.mxu0 }
 0x15f   : > { %v441_v40 = vadd.f32 %v2146_v44, %v440_v35 }
 0x161   : > { %479 = vmatmul.bf16.gmra.mxu0 %v305_v34  ;;  %v573_v46 = vmax.f32 %v441_v40, 0.0 }
 0x162   : > { %v729_v37 = vpop.f32.mrf.mxu1 }
 0x163   : > { %v730_v38 = vadd.f32 %v2196_v33, %v729_v37 }
 0x165   : > { %v888_v41 = vmax.f32 %v730_v38, 0.0  ;;  %v516_v38 = vadd.f32 %v2146_v44, %v515_v30 }
 0x166   : > { %v442_v42 = vpop.f32.mrf.mxu0 }
 0x167   : > { %v443_v43 = vadd.f32 %v2146_v44, %v442_v42  ;;  %v951_v45 = vpack.c.bf16 %v888_v41, %v887_v39  ;;  %v517_v42 = vpop.f32.mrf.mxu3 }
 0x169   : > { %v574_v47 = vmax.f32 %v443_v43, 0.0  ;;  %1058 = vmatmul.bf16.vlgmr.msra.gmra.mxu2 %v951_v45 }
 0x16a   : > { %v732_v49 = vpop.f32.mrf.mxu1 }
 0x16b   : > { %v628_v53 = vpack.c.bf16 %v574_v47, %v573_v46  ;;  %v733_v57 = vadd.f32 %v2196_v33, %v732_v49  ;;  %v603_v46 = vmax.f32 %v516_v38, 0.0  ;;  %v518_v47 = vadd.f32 %v2146_v44, %v517_v42  ;;  %v266_v49 = vld [vmem:[%s2118_s30 + $0x150] sm:$0xff] }
 0x16d   : > { %771 = vmatmul.bf16.gmra.mxu1 %v628_v53  ;;  %v889_v60 = vmax.f32 %v733_v57, 0.0  ;;  %v604_v52 = vmax.f32 %v518_v47, 0.0  ;;  %v309_v53 = vpack.c.bf16 %v267_v50, %v266_v49 }
 0x16e   : > { %v445_v56 = vpop.f32.mrf.mxu0 }
 0x16f   : > { %v446_v61 = vadd.f32 %v2146_v44, %v445_v56  ;;  %v643_v54 = vpack.c.bf16 %v604_v52, %v603_v46  ;;  %v520_v56 = vpop.f32.mrf.mxu3 }
 0x171   : > { %484 = vmatmul.bf16.gmra.mxu0 %v306_v55  ;;  %v575_v2 = vmax.f32 %v446_v61, 0.0  ;;  %846 = vmatmul.bf16.vlgmr.msrb.gmra.mxu3 %v643_v54 }
 0x172   : > { %v734_v58 = vpop.f32.mrf.mxu1 }
 0x173   : > { %v735_v59 = vadd.f32 %v2196_v33, %v734_v58 }
 0x175   : > { %v890_v62 = vmax.f32 %v735_v59, 0.0 }
 0x176   : > { %v447_v63 = vpop.f32.mrf.mxu0 }
 0x177   : > { %v448_v0 = vadd.f32 %v2146_v44, %v447_v63  ;;  %v952_v1 = vpack.c.bf16 %v890_v62, %v889_v60  ;;  %v521_v63 = vadd.f32 %v2146_v44, %v520_v56 }
 0x179   : > { %v576_v3 = vmax.f32 %v448_v0, 0.0  ;;  %1063 = vmatmul.bf16.gmra.mxu2 %v952_v1  ;;  %v605_v6 = vmax.f32 %v521_v63, 0.0 }
 0x17a   : > { %v737_v5 = vpop.f32.mrf.mxu1 }
 0x17b   : > { %v629_v9 = vpack.c.bf16 %v576_v3, %v575_v2  ;;  %v738_v13 = vadd.f32 %v2196_v33, %v737_v5  ;;  %v522_v3 = vpop.f32.mrf.mxu3 }
 0x17c   : > { %v523_v7 = vadd.f32 %v2146_v44, %v522_v3 }
 0x17d   : > { %776 = vmatmul.bf16.gmra.mxu1 %v629_v9  ;;  %v891_v16 = vmax.f32 %v738_v13, 0.0  ;;  %v268_v9 = vld [vmem:[%s2118_s30 + $0x160] sm:$0xff] }
 0x17e   : > { %v450_v12 = vpop.f32.mrf.mxu0  ;;  %v310_v13 = vpack.c.bf16 %v269_v10, %v268_v9 }
 0x17f   : > { %v451_v17 = vadd.f32 %v2146_v44, %v450_v12  ;;  %v606_v12 = vmax.f32 %v523_v7, 0.0 }
 0x181   : > { %489 = vmatmul.bf16.gmra.mxu0 %v307_v11  ;;  %v577_v22 = vmax.f32 %v451_v17, 0.0 }
 0x182   : > { %v739_v14 = vpop.f32.mrf.mxu1 }
 0x183   : > { %v740_v15 = vadd.f32 %v2196_v33, %v739_v14  ;;  %v644_v14 = vpack.c.bf16 %v606_v12, %v605_v6 }
 0x185   : > { %v892_v18 = vmax.f32 %v740_v15, 0.0  ;;  %851 = vmatmul.bf16.gmra.mxu3 %v644_v14 }
 0x186   : > { %v452_v19 = vpop.f32.mrf.mxu0 }
 0x187   : > { %v453_v20 = vadd.f32 %v2146_v44, %v452_v19  ;;  %v953_v21 = vpack.c.bf16 %v892_v18, %v891_v16  ;;  %v525_v16 = vpop.f32.mrf.mxu3 }
 0x189   : > { %v578_v23 = vmax.f32 %v453_v20, 0.0  ;;  %1068 = vmatmul.bf16.gmra.mxu2 %v953_v21 }
 0x18a   : > { %v742_v24 = vpop.f32.mrf.mxu1 }
 0x18b   : > { %v630_v27 = vpack.c.bf16 %v578_v23, %v577_v22  ;;  %v743_v31 = vadd.f32 %v2196_v33, %v742_v24  ;;  %v526_v23 = vadd.f32 %v2146_v44, %v525_v16 }
 0x18d   : > { %781 = vmatmul.bf16.gmra.mxu1 %v630_v27  ;;  %v893_v35 = vmax.f32 %v743_v31, 0.0  ;;  %v607_v30 = vmax.f32 %v526_v23, 0.0 }
 0x18e   : > { %v455_v29 = vpop.f32.mrf.mxu0 }
 0x18f   : > { %v456_v36 = vadd.f32 %v2146_v44, %v455_v29  ;;  %v527_v27 = vpop.f32.mrf.mxu3 }
 0x190   : > { %v528_v31 = vadd.f32 %v2146_v44, %v527_v27 }
 0x191   : > { %494 = vmatmul.bf16.gmra.mxu0 %v308_v28  ;;  %v579_v43 = vmax.f32 %v456_v36, 0.0 }
 0x192   : > { %v744_v32 = vpop.f32.mrf.mxu1 }
 0x193   : > { %v745_v34 = vadd.f32 %v2196_v33, %v744_v32 }
 0x195   : > { %v894_v37 = vmax.f32 %v745_v34, 0.0  ;;  %v270_v34 = vld [vmem:[%s2118_s30 + $0x170] sm:$0xff] }
 0x196   : > { %v457_v39 = vpop.f32.mrf.mxu0 }
 0x197   : > { %v458_v40 = vadd.f32 %v2146_v44, %v457_v39  ;;  %v954_v41 = vpack.c.bf16 %v894_v37, %v893_v35  ;;  %v271_v35 = vld [vmem:[%s2118_s30 + $0x178] sm:$0xff]  ;;  %v608_v37 = vmax.f32 %v528_v31, 0.0 }
 0x198   : > { %v311_v38 = vpack.c.bf16 %v271_v35, %v270_v34  ;;  %v2261_v35 = vld [vmem:[#allocation7 + $0x2] ss:$0 sm:$0xff] }
 0x199   : > { %v580_v45 = vmax.f32 %v458_v40, 0.0  ;;  %1073 = vmatmul.bf16.gmra.mxu2 %v954_v41  ;;  %v645_v39 = vpack.c.bf16 %v608_v37, %v607_v30  ;;  %v530_v41 = vpop.f32.mrf.mxu3 }
 0x19a   : > { %v747_v48 = vpop.f32.mrf.mxu1  ;;  %v531_v49 = vadd.f32 %v2146_v44, %v530_v41 }
 0x19b   : > { %v631_v51 = vpack.c.bf16 %v580_v45, %v579_v43  ;;  %v748_v57 = vadd.f32 %v2196_v33, %v747_v48  ;;  %856 = vmatmul.bf16.gmra.mxu3 %v645_v39 }
 0x19c   : > { %v609_v56 = vmax.f32 %v531_v49, 0.0 }
 0x19d   : > { %786 = vmatmul.bf16.gmra.mxu1 %v631_v51  ;;  %v895_v60 = vmax.f32 %v748_v57, 0.0 }
 0x19e   : > { %v460_v55 = vpop.f32.mrf.mxu0 }
 0x19f   : > { %v461_v61 = vadd.f32 %v2146_v44, %v460_v55 }
 0x1a1   : > { %499 = vmatmul.bf16.gmra.mxu0 %v309_v53  ;;  %v581_v4 = vmax.f32 %v461_v61, 0.0  ;;  %v532_v53 = vpop.f32.mrf.mxu3 }
 0x1a2   : > { %v749_v58 = vpop.f32.mrf.mxu1  ;;  %v533_v57 = vadd.f32 %v2146_v44, %v532_v53 }
 0x1a3   : > { %v750_v59 = vadd.f32 %v2196_v33, %v749_v58 }
 0x1a5   : > { %v896_v62 = vmax.f32 %v750_v59, 0.0 }
 0x1a6   : > { %v462_v0 = vpop.f32.mrf.mxu0 }
 0x1a7   : > { %v463_v1 = vadd.f32 %v2146_v44, %v462_v0  ;;  %v955_v2 = vpack.c.bf16 %v896_v62, %v895_v60  ;;  %v610_v60 = vmax.f32 %v533_v57, 0.0 }
 0x1a9   : > { %v582_v5 = vmax.f32 %v463_v1, 0.0  ;;  %1078 = vmatmul.bf16.gmra.mxu2 %v955_v2  ;;  %v646_v61 = vpack.c.bf16 %v610_v60, %v609_v56  ;;  %v535_v63 = vpop.f32.mrf.mxu3 }
 0x1aa   : > { %v752_v8 = vpop.f32.mrf.mxu1  ;;  %v536_v7 = vadd.f32 %v2146_v44, %v535_v63 }
 0x1ab   : > { %v632_v11 = vpack.c.bf16 %v582_v5, %v581_v4  ;;  %v753_v17 = vadd.f32 %v2196_v33, %v752_v8  ;;  %861 = vmatmul.bf16.gmra.mxu3 %v646_v61 }
 0x1ad   : > { %791 = vmatmul.bf16.gmra.mxu1 %v632_v11  ;;  %v897_v20 = vmax.f32 %v753_v17, 0.0 }
 0x1ae   : > { %v465_v15 = vpop.f32.mrf.mxu0 }
 0x1af   : > { %v466_v21 = vadd.f32 %v2146_v44, %v465_v15 }
 0x1b1   : > { %504 = vmatmul.bf16.gmra.mxu0 %v310_v13  ;;  %v583_v28 = vmax.f32 %v466_v21, 0.0  ;;  %v537_v10 = vpop.f32.mrf.mxu3  ;;  %v611_v13 = vmax.f32 %v536_v7, 0.0 }
 0x1b2   : > { %v754_v18 = vpop.f32.mrf.mxu1  ;;  %v538_v14 = vadd.f32 %v2146_v44, %v537_v10 }
 0x1b3   : > { %v755_v19 = vadd.f32 %v2196_v33, %v754_v18 }
 0x1b4   : > { %v612_v17 = vmax.f32 %v538_v14, 0.0 }
 0x1b5   : > { %v898_v22 = vmax.f32 %v755_v19, 0.0 }
 0x1b6   : > { %v467_v24 = vpop.f32.mrf.mxu0  ;;  %v647_v18 = vpack.c.bf16 %v612_v17, %v611_v13 }
 0x1b7   : > { %v468_v25 = vadd.f32 %v2146_v44, %v467_v24  ;;  %v956_v26 = vpack.c.bf16 %v898_v22, %v897_v20 }
 0x1b9   : > { %v584_v29 = vmax.f32 %v468_v25, 0.0  ;;  %1083 = vmatmul.bf16.gmra.mxu2 %v956_v26  ;;  %v540_v20 = vpop.f32.mrf.mxu3 }
 0x1ba   : > { %v757_v32 = vpop.f32.mrf.mxu1 }
 0x1bb   : > { %v633_v36 = vpack.c.bf16 %v584_v29, %v583_v28  ;;  %v758_v42 = vadd.f32 %v2196_v33, %v757_v32  ;;  %866 = vmatmul.bf16.gmra.mxu3 %v647_v18  ;;  %v541_v28 = vadd.f32 %v2146_v44, %v540_v20 }
 0x1bd   : > { %796 = vmatmul.bf16.gmra.mxu1 %v633_v36  ;;  %v899_v46 = vmax.f32 %v758_v42, 0.0  ;;  %v613_v36 = vmax.f32 %v541_v28, 0.0 }
 0x1be   : > { %v470_v40 = vpop.f32.mrf.mxu0 }
 0x1bf   : > { %v471_v47 = vadd.f32 %v2146_v44, %v470_v40 }
 0x1c1   : > { %509 = vmatmul.bf16.gmra.mxu0 %v311_v38  ;;  %v585_v54 = vmax.f32 %v471_v47, 0.0  ;;  %v542_v31 = vpop.f32.mrf.mxu3 }
 0x1c2   : > { %v759_v43 = vpop.f32.mrf.mxu1  ;;  %v543_v37 = vadd.f32 %v2146_v44, %v542_v31 }
 0x1c3   : > { %v760_v45 = vadd.f32 %v2196_v33, %v759_v43 }
 0x1c4   : > { %v614_v40 = vmax.f32 %v543_v37, 0.0 }
 0x1c5   : > { %v900_v48 = vmax.f32 %v760_v45, 0.0 }
 0x1c6   : > { %v472_v50 = vpop.f32.mrf.mxu0  ;;  %v648_v43 = vpack.c.bf16 %v614_v40, %v613_v36 }
 0x1c7   : > { %v473_v51 = vadd.f32 %v2146_v44, %v472_v50  ;;  %v957_v52 = vpack.c.bf16 %v900_v48, %v899_v46 }
 0x1c9   : > { %v586_v55 = vmax.f32 %v473_v51, 0.0  ;;  %1088 = vmatmul.bf16.gmra.mxu2 %v957_v52  ;;  %v545_v46 = vpop.f32.mrf.mxu3 }
 0x1ca   : > { %v762_v58 = vpop.f32.mrf.mxu1  ;;  %v546_v57 = vadd.f32 %v2146_v44, %v545_v46 }
 0x1cb   : > { %v634_v59 = vpack.c.bf16 %v586_v55, %v585_v54  ;;  %v763_v0 = vadd.f32 %v2196_v33, %v762_v58  ;;  %871 = vmatmul.bf16.gmra.mxu3 %v648_v43 }
 0x1cc   : > { %v615_v63 = vmax.f32 %v546_v57, 0.0 }
 0x1cd   : > { %801 = vmatmul.bf16.gmra.mxu1 %v634_v59  ;;  %v901_v3 = vmax.f32 %v763_v0, 0.0 }
 0x1ce   : > { %v475_v62 = vpop.f32.mrf.mxu0 }
 0x1cf   : > { %v476_v4 = vadd.f32 %v2146_v44, %v475_v62 }
 0x1d1   : > { %v587_v11 = vmax.f32 %v476_v4, 0.0  ;;  %v547_v60 = vpop.f32.mrf.mxu3 }
 0x1d2   : > { %v764_v1 = vpop.f32.mrf.mxu1  ;;  %v548_v0 = vadd.f32 %v2146_v44, %v547_v60 }
 0x1d3   : > { %v765_v2 = vadd.f32 %v2196_v33, %v764_v1 }
 0x1d5   : > { %v902_v5 = vmax.f32 %v765_v2, 0.0 }
 0x1d6   : > { %v477_v6 = vpop.f32.mrf.mxu0 }
 0x1d7   : > { %v478_v8 = vadd.f32 %v2146_v44, %v477_v6  ;;  %v958_v9 = vpack.c.bf16 %v902_v5, %v901_v3  ;;  %v616_v3 = vmax.f32 %v548_v0, 0.0 }
 0x1d9   : > { %v588_v12 = vmax.f32 %v478_v8, 0.0  ;;  %1093 = vmatmul.bf16.gmra.mxu2 %v958_v9  ;;  %v649_v7 = vpack.c.bf16 %v616_v3, %v615_v63  ;;  %v550_v9 = vpop.f32.mrf.mxu3 }
 0x1da   : > { %v767_v15 = vpop.f32.mrf.mxu1  ;;  %v551_v20 = vadd.f32 %v2146_v44, %v550_v9 }
 0x1db   : > { %v635_v16 = vpack.c.bf16 %v588_v12, %v587_v11  ;;  %v768_v21 = vadd.f32 %v2196_v33, %v767_v15  ;;  %876 = vmatmul.bf16.gmra.mxu3 %v649_v7 }
 0x1dd   : > { %806 = vmatmul.bf16.gmra.mxu1 %v635_v16  ;;  %v903_v24 = vmax.f32 %v768_v21, 0.0 }
 0x1de   : > { %v480_v19 = vpop.f32.mrf.mxu0 }
 0x1df   : > { %v481_v25 = vadd.f32 %v2146_v44, %v480_v19 }
 0x1e1   : > { %v589_v32 = vmax.f32 %v481_v25, 0.0 }
 0x1e2   : > { %v769_v22 = vpop.f32.mrf.mxu1 }
 0x1e3   : > { %v770_v23 = vadd.f32 %v2196_v33, %v769_v22 }
 0x1e5   : > { %v904_v26 = vmax.f32 %v770_v23, 0.0  ;;  %v552_v23 = vpop.f32.mrf.mxu3 }
 0x1e6   : > { %v482_v27 = vpop.f32.mrf.mxu0 }
 0x1e7   : > { %v483_v29 = vadd.f32 %v2146_v44, %v482_v27  ;;  %v959_v30 = vpack.c.bf16 %v904_v26, %v903_v24  ;;  %v617_v26 = vmax.f32 %v551_v20, 0.0  ;;  %v553_v27 = vadd.f32 %v2146_v44, %v552_v23 }
 0x1e9   : > { %v590_v34 = vmax.f32 %v483_v29, 0.0  ;;  %1098 = vmatmul.bf16.gmra.mxu2 %v959_v30  ;;  %v618_v30 = vmax.f32 %v553_v27, 0.0 }
 0x1ea   : > { %v772_v38 = vpop.f32.mrf.mxu1 }
 0x1eb   : > { %v636_v39 = vpack.c.bf16 %v590_v34, %v589_v32  ;;  %v773_v47 = vadd.f32 %v2196_v33, %v772_v38  ;;  %v650_v36 = vpack.c.bf16 %v618_v30, %v617_v26 }
 0x1ec   : > { %v1059_v41 = vpop.f32.mrf.mxu2 }
 0x1ed   : > { %v1060_v42 = vadd.f32 %v2261_v35, %v1059_v41  ;;  %811 = vmatmul.bf16.gmra.mxu1 %v636_v39  ;;  %v905_v52 = vmax.f32 %v773_v47, 0.0  ;;  %881 = vmatmul.bf16.gmra.mxu3 %v650_v36 }
 0x1ee   : > { %v485_v45 = vpop.f32.mrf.mxu0 }
 0x1ef   : > { %1695 = vtanh.f32 %v1060_v42  ;;  %v486_v53 = vadd.f32 %v2146_v44, %v485_v45 }
 0x1f1   : > { %v591_v61 = vmax.f32 %v486_v53, 0.0 }
 0x1f2   : > { %v774_v48 = vpop.f32.mrf.mxu1 }
 0x1f3   : > { %v775_v49 = vadd.f32 %v2196_v33, %v774_v48 }
 0x1f4   : > { %v1061_v50 = vpop.f32.mrf.mxu2 }
 0x1f5   : > { %v1696_v51 = vpop.eup %1695  ;;  %v906_v54 = vmax.f32 %v775_v49, 0.0  ;;  %v1062_v55 = vadd.f32 %v2261_v35, %v1061_v50 }
 0x1f6   : > { %1283 = vst [vmem:[%s2271_s18] sm:$0xff] %v1696_v51  ;;  %v487_v56 = vpop.f32.mrf.mxu0 }
 0x1f7   : > { %1697 = vtanh.f32 %v1062_v55  ;;  %v488_v58 = vadd.f32 %v2146_v44, %v487_v56  ;;  %v960_v59 = vpack.c.bf16 %v906_v54, %v905_v52 }
 0x1f9   : > { %v592_v62 = vmax.f32 %v488_v58, 0.0  ;;  %1103 = vmatmul.bf16.gmra.mxu2 %v960_v59 }
 0x1fa   : > { %v777_v1 = vpop.f32.mrf.mxu1 }
 0x1fb   : > { %v637_v2 = vpack.c.bf16 %v592_v62, %v591_v61  ;;  %v778_v10 = vadd.f32 %v2196_v33, %v777_v1  ;;  %v847_v61 = vpop.f32.mrf.mxu3 }
 0x1fc   : > { %v1064_v4 = vpop.f32.mrf.mxu2 }
 0x1fd   : > { %v1698_v5 = vpop.eup %1697  ;;  %v1065_v6 = vadd.f32 %v2261_v35, %v1064_v4  ;;  %816 = vmatmul.bf16.gmra.mxu1 %v637_v2  ;;  %v907_v15 = vmax.f32 %v778_v10, 0.0 }
 0x1fe   : > { %1284 = vst [vmem:[%s2271_s18 + $0x8] sm:$0xff] %v1698_v5  ;;  %v490_v8 = vpop.f32.mrf.mxu0 }
 0x1ff   : > { %1699 = vtanh.f32 %v1065_v6  ;;  %v491_v16 = vadd.f32 %v2146_v44, %v490_v8  ;;  %v848_v8 = vadd.f32 %v2196_v33, %v847_v61 }
 0x201   : > { %v593_v24 = vmax.f32 %v491_v16, 0.0 }
 0x202   : > { %v779_v11 = vpop.f32.mrf.mxu1 }
 0x203   : > { %v780_v12 = vadd.f32 %v2196_v33, %v779_v11 }
 0x204   : > { %v1066_v13 = vpop.f32.mrf.mxu2 }
 0x205   : > { %v1700_v14 = vpop.eup %1699  ;;  %v908_v17 = vmax.f32 %v780_v12, 0.0  ;;  %v1067_v18 = vadd.f32 %v2261_v35, %v1066_v13  ;;  %v849_v12 = vpop.f32.mrf.mxu3 }
 0x206   : > { %1285 = vst [vmem:[%s2271_s18 + $0x10] sm:$0xff] %v1700_v14  ;;  %v492_v19 = vpop.f32.mrf.mxu0  ;;  %v935_v14 = vmax.f32 %v848_v8, 0.0 }
 0x207   : > { %1701 = vtanh.f32 %v1067_v18  ;;  %v493_v21 = vadd.f32 %v2146_v44, %v492_v19  ;;  %v961_v22 = vpack.c.bf16 %v908_v17, %v907_v15  ;;  %v850_v15 = vadd.f32 %v2196_v33, %v849_v12 }
 0x209   : > { %v594_v25 = vmax.f32 %v493_v21, 0.0  ;;  %1108 = vmatmul.bf16.gmra.mxu2 %v961_v22  ;;  %v936_v19 = vmax.f32 %v850_v15, 0.0 }
 0x20a   : > { %v782_v28 = vpop.f32.mrf.mxu1 }
 0x20b   : > { %v638_v29 = vpack.c.bf16 %v594_v25, %v593_v24  ;;  %v783_v38 = vadd.f32 %v2196_v33, %v782_v28  ;;  %v975_v20 = vpack.c.bf16 %v936_v19, %v935_v14  ;;  %v1823_v28 = vld [vmem:[#allocation7] ss:$0 sm:$0xff] }
 0x20c   : > { %v1069_v31 = vpop.f32.mrf.mxu2 }
 0x20d   : > { %v1702_v32 = vpop.eup %1701  ;;  %v1070_v34 = vadd.f32 %v2261_v35, %v1069_v31  ;;  %821 = vmatmul.bf16.gmra.mxu1 %v638_v29  ;;  %v909_v43 = vmax.f32 %v783_v38, 0.0  ;;  %1178 = vmatmul.bf16.vlgmr.msra.gmra.mxu3 %v975_v20  ;;  %v852_v23 = vpop.f32.mrf.mxu3 }
 0x20e   : > { %1286 = vst [vmem:[%s2271_s18 + $0x18] sm:$0xff] %v1702_v32  ;;  %v495_v37 = vpop.f32.mrf.mxu0 }
 0x20f   : > { %1703 = vtanh.f32 %v1070_v34  ;;  %v496_v45 = vadd.f32 %v2146_v44, %v495_v37  ;;  %v853_v37 = vadd.f32 %v2196_v33, %v852_v23 }
 0x211   : > { %v595_v51 = vmax.f32 %v496_v45, 0.0 }
 0x212   : > { %v784_v39 = vpop.f32.mrf.mxu1 }
 0x213   : > { %v785_v40 = vadd.f32 %v2196_v33, %v784_v39 }
 0x214   : > { %v1071_v41 = vpop.f32.mrf.mxu2 }
 0x215   : > { %v1704_v42 = vpop.eup %1703  ;;  %v910_v46 = vmax.f32 %v785_v40, 0.0  ;;  %v1072_v47 = vadd.f32 %v2261_v35, %v1071_v41  ;;  %v854_v41 = vpop.f32.mrf.mxu3 }
 0x216   : > { %1287 = vst [vmem:[%s2271_s18 + $0x20] sm:$0xff] %v1704_v42  ;;  %v497_v48 = vpop.f32.mrf.mxu0  ;;  %v855_v45 = vadd.f32 %v2196_v33, %v854_v41 }
 0x217   : > { %1705 = vtanh.f32 %v1072_v47  ;;  %v498_v49 = vadd.f32 %v2146_v44, %v497_v48  ;;  %v962_v50 = vpack.c.bf16 %v910_v46, %v909_v43  ;;  %v937_v43 = vmax.f32 %v853_v37, 0.0 }
 0x219   : > { %v596_v52 = vmax.f32 %v498_v49, 0.0  ;;  %1113 = vmatmul.bf16.gmra.mxu2 %v962_v50  ;;  %v938_v49 = vmax.f32 %v855_v45, 0.0 }
 0x21a   : > { %v787_v53 = vpop.f32.mrf.mxu1 }
 0x21b   : > { %v639_v54 = vpack.c.bf16 %v596_v52, %v595_v51  ;;  %v788_v59 = vadd.f32 %v2196_v33, %v787_v53  ;;  %v976_v51 = vpack.c.bf16 %v938_v49, %v937_v43 }
 0x21c   : > { %v1074_v55 = vpop.f32.mrf.mxu2 }
 0x21d   : > { %v1706_v56 = vpop.eup %1705  ;;  %v1075_v57 = vadd.f32 %v2261_v35, %v1074_v55  ;;  %826 = vmatmul.bf16.gmra.mxu1 %v639_v54  ;;  %v911_v1 = vmax.f32 %v788_v59, 0.0  ;;  %1183 = vmatmul.bf16.gmra.mxu3 %v976_v51 }
 0x21e   : > { %1288 = vst [vmem:[%s2271_s18 + $0x28] sm:$0xff] %v1706_v56  ;;  %v500_v58 = vpop.f32.mrf.mxu0  ;;  %v857_v54 = vpop.f32.mrf.mxu3 }
 0x21f   : > { %1707 = vtanh.f32 %v1075_v57  ;;  %v501_v2 = vadd.f32 %v2146_v44, %v500_v58 }
 0x221   : > { %v597_v9 = vmax.f32 %v501_v2, 0.0 }
 0x222   : > { %v789_v60 = vpop.f32.mrf.mxu1 }
 0x223   : > { %v790_v62 = vadd.f32 %v2196_v33, %v789_v60 }
 0x224   : > { %v1076_v63 = vpop.f32.mrf.mxu2 }
 0x225   : > { %v1708_v0 = vpop.eup %1707  ;;  %v912_v3 = vmax.f32 %v790_v62, 0.0  ;;  %v1077_v4 = vadd.f32 %v2261_v35, %v1076_v63 }
 0x226   : > { %1289 = vst [vmem:[%s2271_s18 + $0x30] sm:$0xff] %v1708_v0  ;;  %v502_v5 = vpop.f32.mrf.mxu0 }
 0x227   : > { %v963_v6 = vpack.c.bf16 %v912_v3, %v911_v1  ;;  %1709 = vtanh.f32 %v1077_v4  ;;  %v503_v7 = vadd.f32 %v2146_v44, %v502_v5  ;;  %v858_v1 = vadd.f32 %v2196_v33, %v857_v54  ;;  %v859_v5 = vpop.f32.mrf.mxu3 }
 0x228   : > { %v860_v8 = vadd.f32 %v2196_v33, %v859_v5 }
 0x229   : > { %v598_v10 = vmax.f32 %v503_v7, 0.0  ;;  %1118 = vmatmul.bf16.gmra.mxu2 %v963_v6  ;;  %v939_v7 = vmax.f32 %v858_v1, 0.0 }
 0x22a   : > { %v792_v11 = vpop.f32.mrf.mxu1  ;;  %v940_v12 = vmax.f32 %v860_v8, 0.0 }
 0x22b   : > { %v640_v13 = vpack.c.bf16 %v598_v10, %v597_v9  ;;  %v793_v21 = vadd.f32 %v2196_v33, %v792_v11 }
 0x22c   : > { %v1079_v16 = vpop.f32.mrf.mxu2 }
 0x22d   : > { %v1710_v17 = vpop.eup %1709  ;;  %v1080_v18 = vadd.f32 %v2261_v35, %v1079_v16  ;;  %831 = vmatmul.bf16.gmra.mxu1 %v640_v13  ;;  %v913_v27 = vmax.f32 %v793_v21, 0.0  ;;  %v977_v13 = vpack.c.bf16 %v940_v12, %v939_v7 }
 0x22e   : > { %1290 = vst [vmem:[%s2271_s18 + $0x38] sm:$0xff] %v1710_v17  ;;  %v505_v44 = vpop.f32.mrf.mxu0 }
 0x22f   : > { %1711 = vtanh.f32 %v1080_v18  ;;  %v506_v29 = vadd.f32 %v1823_v28, %v505_v44  ;;  %1188 = vmatmul.bf16.gmra.mxu3 %v977_v13  ;;  %v862_v16 = vpop.f32.mrf.mxu3 }
 0x230   : > { %v863_v23 = vadd.f32 %v2196_v33, %v862_v16 }
 0x231   : > { %v599_v38 = vmax.f32 %v506_v29, 0.0 }
 0x232   : > { %v794_v22 = vpop.f32.mrf.mxu1 }
 0x233   : > { %v795_v24 = vadd.f32 %v2196_v33, %v794_v22 }
 0x234   : > { %v1081_v25 = vpop.f32.mrf.mxu2 }
 0x235   : > { %v1712_v26 = vpop.eup %1711  ;;  %v914_v30 = vmax.f32 %v795_v24, 0.0  ;;  %v1082_v31 = vadd.f32 %v2261_v35, %v1081_v25 }
 0x236   : > { %1291 = vst [vmem:[%s2271_s18 + $0x40] sm:$0xff] %v1712_v26  ;;  %v507_v32 = vpop.f32.mrf.mxu0  ;;  %v941_v26 = vmax.f32 %v863_v23, 0.0 }
 0x237   : > { %v964_v34 = vpack.c.bf16 %v914_v30, %v913_v27  ;;  %1713 = vtanh.f32 %v1082_v31  ;;  %v508_v36 = vadd.f32 %v1823_v28, %v507_v32  ;;  %v864_v25 = vpop.f32.mrf.mxu3 }
 0x238   : > { %v865_v27 = vadd.f32 %v2196_v33, %v864_v25 }
 0x239   : > { %v600_v39 = vmax.f32 %v508_v36, 0.0  ;;  %1123 = vmatmul.bf16.gmra.mxu2 %v964_v34 }
 0x23a   : > { %v797_v40 = vpop.f32.mrf.mxu1  ;;  %v942_v31 = vmax.f32 %v865_v27, 0.0 }
 0x23b   : > { %v641_v42 = vpack.c.bf16 %v600_v39, %v599_v38  ;;  %v798_v52 = vadd.f32 %v2196_v33, %v797_v40 }
 0x23c   : > { %v1084_v46 = vpop.f32.mrf.mxu2  ;;  %v978_v32 = vpack.c.bf16 %v942_v31, %v941_v26 }
 0x23d   : > { %v1714_v47 = vpop.eup %1713  ;;  %v1085_v48 = vadd.f32 %v2261_v35, %v1084_v46  ;;  %836 = vmatmul.bf16.gmra.mxu1 %v641_v42  ;;  %v915_v58 = vmax.f32 %v798_v52, 0.0 }
 0x23e   : > { %1292 = vst [vmem:[%s2271_s18 + $0x48] sm:$0xff] %v1714_v47  ;;  %v510_v50 = vpop.f32.mrf.mxu0 }
 0x23f   : > { %1715 = vtanh.f32 %v1085_v48  ;;  %v511_v59 = vadd.f32 %v1823_v28, %v510_v50  ;;  %1193 = vmatmul.bf16.gmra.mxu3 %v978_v32  ;;  %v867_v37 = vpop.f32.mrf.mxu3 }
 0x240   : > { %v868_v46 = vadd.f32 %v2196_v33, %v867_v37 }
 0x241   : > { %v601_v2 = vmax.f32 %v511_v59, 0.0 }
 0x242   : > { %v799_v53 = vpop.f32.mrf.mxu1  ;;  %v943_v49 = vmax.f32 %v868_v46, 0.0 }
 0x243   : > { %v800_v55 = vadd.f32 %v2196_v33, %v799_v53 }
 0x244   : > { %v1086_v56 = vpop.f32.mrf.mxu2 }
 0x245   : > { %v1716_v57 = vpop.eup %1715  ;;  %v916_v60 = vmax.f32 %v800_v55, 0.0  ;;  %v1087_v61 = vadd.f32 %v2261_v35, %v1086_v56 }
 0x246   : > { %1293 = vst [vmem:[%s2271_s18 + $0x50] sm:$0xff] %v1716_v57  ;;  %v512_v62 = vpop.f32.mrf.mxu0 }
 0x247   : > { %v965_v63 = vpack.c.bf16 %v916_v60, %v915_v58  ;;  %1717 = vtanh.f32 %v1087_v61  ;;  %v513_v0 = vadd.f32 %v1823_v28, %v512_v62  ;;  %v869_v48 = vpop.f32.mrf.mxu3 }
 0x248   : > { %v870_v50 = vadd.f32 %v2196_v33, %v869_v48 }
 0x249   : > { %v602_v3 = vmax.f32 %v513_v0, 0.0  ;;  %1128 = vmatmul.bf16.gmra.mxu2 %v965_v63 }
 0x24a   : > { %v802_v4 = vpop.f32.mrf.mxu1  ;;  %v944_v54 = vmax.f32 %v870_v50, 0.0 }
 0x24b   : > { %v642_v6 = vpack.c.bf16 %v602_v3, %v601_v2  ;;  %v803_v14 = vadd.f32 %v2196_v33, %v802_v4 }
 0x24c   : > { %v1089_v9 = vpop.f32.mrf.mxu2  ;;  %v979_v55 = vpack.c.bf16 %v944_v54, %v943_v49 }
 0x24d   : > { %v1718_v10 = vpop.eup %1717  ;;  %v1090_v11 = vadd.f32 %v2261_v35, %v1089_v9  ;;  %841 = vmatmul.bf16.gmra.mxu1 %v642_v6  ;;  %v917_v44 = vmax.f32 %v803_v14, 0.0 }
 0x24e   : > { %1294 = vst [vmem:[%s2271_s18 + $0x58] sm:$0xff] %v1718_v10 }
 0x24f   : > { %1719 = vtanh.f32 %v1090_v11  ;;  %1198 = vmatmul.bf16.gmra.mxu3 %v979_v55  ;;  %v872_v58 = vpop.f32.mrf.mxu3 }
 0x250   : > { %v873_v2 = vadd.f32 %v2196_v33, %v872_v58 }
 0x252   : > { %v804_v15 = vpop.f32.mrf.mxu1  ;;  %v945_v5 = vmax.f32 %v873_v2, 0.0 }
 0x253   : > { %v805_v17 = vadd.f32 %v2196_v33, %v804_v15 }
 0x254   : > { %v1091_v18 = vpop.f32.mrf.mxu2 }
 0x255   : > { %v1720_v19 = vpop.eup %1719  ;;  %v918_v20 = vmax.f32 %v805_v17, 0.0  ;;  %v1092_v21 = vadd.f32 %v2261_v35, %v1091_v18 }
 0x256   : > { %1295 = vst [vmem:[%s2271_s18 + $0x60] sm:$0xff] %v1720_v19 }
 0x257   : > { %v966_v22 = vpack.c.bf16 %v918_v20, %v917_v44  ;;  %1721 = vtanh.f32 %v1092_v21  ;;  %v874_v4 = vpop.f32.mrf.mxu3  ;;  %v2351_v21 = vld [vmem:[#allocation7 + $0x1] ss:$0 sm:$0xff] }
 0x258   : > { %v875_v6 = vadd.f32 %v2196_v33, %v874_v4 }
 0x259   : > { %1133 = vmatmul.bf16.gmra.mxu2 %v966_v22 }
 0x25a   : > { %v807_v24 = vpop.f32.mrf.mxu1  ;;  %v946_v10 = vmax.f32 %v875_v6, 0.0 }
 0x25b   : > { %v808_v34 = vadd.f32 %v2196_v33, %v807_v24 }
 0x25c   : > { %v1094_v28 = vpop.f32.mrf.mxu2  ;;  %v980_v11 = vpack.c.bf16 %v946_v10, %v945_v5 }
 0x25d   : > { %v1722_v29 = vpop.eup %1721  ;;  %v1095_v30 = vadd.f32 %v2261_v35, %v1094_v28  ;;  %v919_v41 = vmax.f32 %v808_v34, 0.0 }
 0x25e   : > { %1296 = vst [vmem:[%s2271_s18 + $0x68] sm:$0xff] %v1722_v29 }
 0x25f   : > { %1723 = vtanh.f32 %v1095_v30  ;;  %1203 = vmatmul.bf16.gmra.mxu3 %v980_v11  ;;  %v877_v14 = vpop.f32.mrf.mxu3 }
 0x260   : > { %v878_v22 = vadd.f32 %v2351_v21, %v877_v14 }
 0x262   : > { %v809_v36 = vpop.f32.mrf.mxu1  ;;  %v947_v25 = vmax.f32 %v878_v22, 0.0 }
 0x263   : > { %v810_v38 = vadd.f32 %v2196_v33, %v809_v36 }
 0x264   : > { %v1096_v39 = vpop.f32.mrf.mxu2 }
 0x265   : > { %v1724_v40 = vpop.eup %1723  ;;  %v920_v42 = vmax.f32 %v810_v38, 0.0  ;;  %v1097_v43 = vadd.f32 %v2261_v35, %v1096_v39 }
 0x266   : > { %1297 = vst [vmem:[%s2271_s18 + $0x70] sm:$0xff] %v1724_v40 }
 0x267   : > { %v967_v45 = vpack.c.bf16 %v920_v42, %v919_v41  ;;  %1725 = vtanh.f32 %v1097_v43  ;;  %v879_v24 = vpop.f32.mrf.mxu3 }
 0x269   : > { %1138 = vmatmul.bf16.gmra.mxu2 %v967_v45 }
 0x26a   : > { %v812_v47 = vpop.f32.mrf.mxu1 }
 0x26b   : > { %v813_v56 = vadd.f32 %v2196_v33, %v812_v47 }
 0x26c   : > { %v1099_v51 = vpop.f32.mrf.mxu2 }
 0x26d   : > { %v1726_v52 = vpop.eup %1725  ;;  %v1100_v53 = vadd.f32 %v2261_v35, %v1099_v51  ;;  %v921_v62 = vmax.f32 %v813_v56, 0.0 }
 0x26e   : > { %1298 = vst [vmem:[%s2271_s18 + $0x78] sm:$0xff] %v1726_v52 }
 0x26f   : > { %1727 = vtanh.f32 %v1100_v53 }
 0x270   : > { %v882_v34 = vpop.f32.mrf.mxu3 }
 0x271   : > { %v883_v43 = vadd.f32 %v2351_v21, %v882_v34 }
 0x272   : > { %v814_v57 = vpop.f32.mrf.mxu1 }
 0x273   : > { %v815_v59 = vadd.f32 %v2196_v33, %v814_v57  ;;  %v949_v47 = vmax.f32 %v883_v43, 0.0 }
 0x274   : > { %v1101_v60 = vpop.f32.mrf.mxu2 }
 0x275   : > { %v1728_v61 = vpop.eup %1727  ;;  %v922_v63 = vmax.f32 %v815_v59, 0.0  ;;  %v1102_v0 = vadd.f32 %v2261_v35, %v1101_v60 }
 0x276   : > { %1299 = vst [vmem:[%s2271_s18 + $0x80] sm:$0xff] %v1728_v61 }
 0x277   : > { %v968_v1 = vpack.c.bf16 %v922_v63, %v921_v62  ;;  %1729 = vtanh.f32 %v1102_v0 }
 0x278   : > { %v884_v46 = vpop.f32.mrf.mxu3 }
 0x279   : > { %1143 = vmatmul.bf16.gmra.mxu2 %v968_v1  ;;  %v885_v48 = vadd.f32 %v2351_v21, %v884_v46 }
 0x27a   : > { %v817_v3 = vpop.f32.mrf.mxu1 }
 0x27b   : > { %v818_v12 = vadd.f32 %v2196_v33, %v817_v3  ;;  %v950_v52 = vmax.f32 %v885_v48, 0.0 }
 0x27c   : > { %v1104_v7 = vpop.f32.mrf.mxu2 }
 0x27d   : > { %v1730_v8 = vpop.eup %1729  ;;  %v1105_v9 = vadd.f32 %v2261_v35, %v1104_v7  ;;  %v923_v18 = vmax.f32 %v818_v12, 0.0  ;;  %v982_v53 = vpack.c.bf16 %v950_v52, %v949_v47 }
 0x27e   : > { %1300 = vst [vmem:[%s2271_s18 + $0x88] sm:$0xff] %v1730_v8 }
 0x27f   : > { %1731 = vtanh.f32 %v1105_v9 }
 0x282   : > { %v819_v13 = vpop.f32.mrf.mxu1 }
 0x283   : > { %v820_v15 = vadd.f32 %v2196_v33, %v819_v13  ;;  %v880_v33 = vadd.f32 %v2351_v21, %v879_v24 }
 0x284   : > { %v1106_v16 = vpop.f32.mrf.mxu2 }
 0x285   : > { %v1732_v17 = vpop.eup %1731  ;;  %v924_v19 = vmax.f32 %v820_v15, 0.0  ;;  %v1107_v44 = vadd.f32 %v2261_v35, %v1106_v16  ;;  %v948_v29 = vmax.f32 %v880_v33, 0.0 }
 0x286   : > { %1301 = vst [vmem:[%s2271_s18 + $0x90] sm:$0xff] %v1732_v17 }
 0x287   : > { %v969_v20 = vpack.c.bf16 %v924_v19, %v923_v18  ;;  %1733 = vtanh.f32 %v1107_v44  ;;  %v981_v30 = vpack.c.bf16 %v948_v29, %v947_v25 }
 0x289   : > { %1148 = vmatmul.bf16.gmra.mxu2 %v969_v20  ;;  %1208 = vmatmul.bf16.gmra.mxu3 %v981_v30 }
 0x28a   : > { %v822_v23 = vpop.f32.mrf.mxu1 }
 0x28b   : > { %v823_v31 = vadd.f32 %v2351_v21, %v822_v23 }
 0x28c   : > { %v1109_v26 = vpop.f32.mrf.mxu2 }
 0x28d   : > { %v1734_v27 = vpop.eup %1733  ;;  %v1110_v28 = vadd.f32 %v2261_v35, %v1109_v26  ;;  %v925_v39 = vmax.f32 %v823_v31, 0.0 }
 0x28e   : > { %1302 = vst [vmem:[%s2271_s18 + $0x98] sm:$0xff] %v1734_v27 }
 0x28f   : > { %1735 = vtanh.f32 %v1110_v28 }
 0x290   : > { %v1179_v7 = vpop.f32.mrf.mxu3 }
 0x291   : > { %v1180_v18 = vadd.f32 %v2261_v35, %v1179_v7 }
 0x292   : > { %v824_v32 = vpop.f32.mrf.mxu1 }
 0x293   : > { %v825_v36 = vadd.f32 %v2351_v21, %v824_v32 }
 0x294   : > { %v1111_v37 = vpop.f32.mrf.mxu2 }
 0x295   : > { %v1736_v38 = vpop.eup %1735  ;;  %v926_v40 = vmax.f32 %v825_v36, 0.0  ;;  %v1112_v41 = vadd.f32 %v2261_v35, %v1111_v37 }
 0x296   : > { %1303 = vst [vmem:[%s2271_s18 + $0xa0] sm:$0xff] %v1736_v38 }
 0x297   : > { %v970_v42 = vpack.c.bf16 %v926_v40, %v925_v39  ;;  %1737 = vtanh.f32 %v1112_v41 }
 0x298   : > { %v1181_v15 = vpop.f32.mrf.mxu3 }
 0x299   : > { %1153 = vmatmul.bf16.gmra.mxu2 %v970_v42  ;;  %1213 = vmatmul.bf16.gmra.mxu3 %v982_v53  ;;  %v1182_v19 = vadd.f32 %v2261_v35, %v1181_v15 }
 0x29a   : > { %v827_v45 = vpop.f32.mrf.mxu1 }
 0x29b   : > { %v828_v54 = vadd.f32 %v2351_v21, %v827_v45 }
 0x29c   : > { %v1114_v49 = vpop.f32.mrf.mxu2 }
 0x29d   : > { %v1738_v50 = vpop.eup %1737  ;;  %v1115_v51 = vadd.f32 %v2261_v35, %v1114_v49  ;;  %v927_v59 = vmax.f32 %v828_v54, 0.0 }
 0x29e   : > { %1304 = vst [vmem:[%s2271_s18 + $0xa8] sm:$0xff] %v1738_v50 }
 0x29f   : > { %1739 = vtanh.f32 %v1115_v51 }
 0x2a0   : > { %v1184_v24 = vpop.f32.mrf.mxu3 }
 0x2a1   : > { %v1185_v38 = vadd.f32 %v2261_v35, %v1184_v24 }
 0x2a2   : > { %v829_v55 = vpop.f32.mrf.mxu1 }
 0x2a3   : > { %v830_v56 = vadd.f32 %v2351_v21, %v829_v55 }
 0x2a4   : > { %v1116_v57 = vpop.f32.mrf.mxu2 }
 0x2a5   : > { %v1740_v58 = vpop.eup %1739  ;;  %v928_v60 = vmax.f32 %v830_v56, 0.0  ;;  %v1117_v61 = vadd.f32 %v2261_v35, %v1116_v57 }
 0x2a6   : > { %1305 = vst [vmem:[%s2271_s18 + $0xb0] sm:$0xff] %v1740_v58 }
 0x2a7   : > { %v971_v62 = vpack.c.bf16 %v928_v60, %v927_v59  ;;  %1741 = vtanh.f32 %v1117_v61 }
 0x2a8   : > { %v1186_v34 = vpop.f32.mrf.mxu3 }
 0x2a9   : > { %1158 = vmatmul.bf16.gmra.mxu2 %v971_v62  ;;  %v1187_v39 = vadd.f32 %v2261_v35, %v1186_v34 }
 0x2aa   : > { %v832_v63 = vpop.f32.mrf.mxu1 }
 0x2ab   : > { %v833_v3 = vadd.f32 %v2351_v21, %v832_v63 }
 0x2ac   : > { %v1119_v0 = vpop.f32.mrf.mxu2 }
 0x2ad   : > { %v1742_v1 = vpop.eup %1741  ;;  %v1120_v2 = vadd.f32 %v2261_v35, %v1119_v0  ;;  %v929_v9 = vmax.f32 %v833_v3, 0.0 }
 0x2ae   : > { %1306 = vst [vmem:[%s2271_s18 + $0xb8] sm:$0xff] %v1742_v1 }
 0x2af   : > { %1743 = vtanh.f32 %v1120_v2 }
 0x2b2   : > { %v834_v4 = vpop.f32.mrf.mxu1  ;;  %v1189_v45 = vpop.f32.mrf.mxu3 }
 0x2b3   : > { %v835_v5 = vadd.f32 %v2351_v21, %v834_v4  ;;  %v1190_v56 = vadd.f32 %v2261_v35, %v1189_v45 }
 0x2b4   : > { %v1121_v6 = vpop.f32.mrf.mxu2 }
 0x2b5   : > { %v1744_v8 = vpop.eup %1743  ;;  %v930_v10 = vmax.f32 %v835_v5, 0.0  ;;  %v1122_v11 = vadd.f32 %v2261_v35, %v1121_v6 }
 0x2b6   : > { %1307 = vst [vmem:[%s2271_s18 + $0xc0] sm:$0xff] %v1744_v8 }
 0x2b7   : > { %v972_v12 = vpack.c.bf16 %v930_v10, %v929_v9  ;;  %1745 = vtanh.f32 %v1122_v11 }
 0x2b9   : > { %1163 = vmatmul.bf16.gmra.mxu2 %v972_v12 }
 0x2ba   : > { %v837_v13 = vpop.f32.mrf.mxu1  ;;  %v1191_v54 = vpop.f32.mrf.mxu3 }
 0x2bb   : > { %v838_v44 = vadd.f32 %v2351_v21, %v837_v13  ;;  %v1192_v57 = vadd.f32 %v2261_v35, %v1191_v54 }
 0x2bc   : > { %v1124_v14 = vpop.f32.mrf.mxu2 }
 0x2bd   : > { %v1746_v16 = vpop.eup %1745  ;;  %v1125_v17 = vadd.f32 %v2261_v35, %v1124_v14  ;;  %v931_v33 = vmax.f32 %v838_v44, 0.0 }
 0x2be   : > { %1308 = vst [vmem:[%s2271_s18 + $0xc8] sm:$0xff] %v1746_v16 }
 0x2bf   : > { %1747 = vtanh.f32 %v1125_v17 }
 0x2c0   : > { %1749 = vtanh.f32 %v1180_v18 }
 0x2c1   : > { %1751 = vtanh.f32 %v1182_v19 }
 0x2c2   : > { %v839_v20 = vpop.f32.mrf.mxu1  ;;  %v1194_v59 = vpop.f32.mrf.mxu3 }
 0x2c3   : > { %v840_v22 = vadd.f32 %v2351_v21, %v839_v20  ;;  %v1195_v4 = vadd.f32 %v2261_v35, %v1194_v59 }
 0x2c4   : > { %v1126_v23 = vpop.f32.mrf.mxu2 }
 0x2c5   : > { %v1748_v25 = vpop.eup %1747  ;;  %v932_v26 = vmax.f32 %v840_v22, 0.0  ;;  %v1127_v27 = vadd.f32 %v2261_v35, %v1126_v23 }
 0x2c6   : > { %v1750_v28 = vpop.eup %1749  ;;  %1309 = vst [vmem:[%s2271_s18 + $0xd0] sm:$0xff] %v1748_v25 }
 0x2c7   : > { %v1752_v29 = vpop.eup %1751  ;;  %v973_v30 = vpack.c.bf16 %v932_v26, %v931_v33  ;;  %1753 = vtanh.f32 %v1127_v27  ;;  %1331 = vst [vmem:[%s2271_s18 + $0x180] sm:$0xff] %v1750_v28 }
 0x2c8   : > { %1332 = vst [vmem:[%s2271_s18 + $0x188] sm:$0xff] %v1752_v29 }
 0x2c9   : > { %1168 = vmatmul.bf16.gmra.mxu2 %v973_v30 }
 0x2ca   : > { %v842_v31 = vpop.f32.mrf.mxu1  ;;  %v1196_v1 = vpop.f32.mrf.mxu3 }
 0x2cb   : > { %v843_v40 = vadd.f32 %v2351_v21, %v842_v31  ;;  %v1197_v5 = vadd.f32 %v2261_v35, %v1196_v1 }
 0x2cc   : > { %v1129_v32 = vpop.f32.mrf.mxu2 }
 0x2cd   : > { %v1754_v36 = vpop.eup %1753  ;;  %v1130_v37 = vadd.f32 %v2261_v35, %v1129_v32  ;;  %v933_v47 = vmax.f32 %v843_v40, 0.0 }
 0x2ce   : > { %1310 = vst [vmem:[%s2271_s18 + $0xd8] sm:$0xff] %v1754_v36 }
 0x2cf   : > { %1755 = vtanh.f32 %v1130_v37 }
 0x2d0   : > { %1757 = vtanh.f32 %v1185_v38 }
 0x2d1   : > { %1759 = vtanh.f32 %v1187_v39 }
 0x2d2   : > { %v844_v41 = vpop.f32.mrf.mxu1  ;;  %v1199_v7 = vpop.f32.mrf.mxu3 }
 0x2d3   : > { %v845_v42 = vadd.f32 %v2351_v21, %v844_v41  ;;  %v1200_v16 = vadd.f32 %v2261_v35, %v1199_v7 }
 0x2d4   : > { %v1131_v43 = vpop.f32.mrf.mxu2 }
 0x2d5   : > { %v1756_v46 = vpop.eup %1755  ;;  %v934_v48 = vmax.f32 %v845_v42, 0.0  ;;  %v1132_v49 = vadd.f32 %v2261_v35, %v1131_v43 }
 0x2d6   : > { %v1758_v50 = vpop.eup %1757  ;;  %1311 = vst [vmem:[%s2271_s18 + $0xe0] sm:$0xff] %v1756_v46 }
 0x2d7   : > { %v1760_v51 = vpop.eup %1759  ;;  %v974_v52 = vpack.c.bf16 %v934_v48, %v933_v47  ;;  %1761 = vtanh.f32 %v1132_v49  ;;  %1333 = vst [vmem:[%s2271_s18 + $0x190] sm:$0xff] %v1758_v50  ;;  %v1825_v47 = vld [vmem:[#allocation7 + $0x2] ss:$0 sm:$0xff] }
 0x2d8   : > { %1334 = vst [vmem:[%s2271_s18 + $0x198] sm:$0xff] %v1760_v51 }
 0x2d9   : > { %1173 = vmatmul.bf16.gmra.mxu2 %v974_v52 }
 0x2da   : > { %v1201_v13 = vpop.f32.mrf.mxu3 }
 0x2db   : > { %v1202_v17 = vadd.f32 %v2261_v35, %v1201_v13 }
 0x2dc   : > { %v1134_v53 = vpop.f32.mrf.mxu2 }
 0x2dd   : > { %v1762_v21 = vpop.eup %1761  ;;  %v1135_v55 = vadd.f32 %v2261_v35, %v1134_v53 }
 0x2de   : > { %1312 = vst [vmem:[%s2271_s18 + $0xe8] sm:$0xff] %v1762_v21 }
 0x2df   : > { %1763 = vtanh.f32 %v1135_v55 }
 0x2e0   : > { %1765 = vtanh.f32 %v1190_v56 }
 0x2e1   : > { %1767 = vtanh.f32 %v1192_v57 }
 0x2e2   : > { %v1204_v19 = vpop.f32.mrf.mxu3 }
 0x2e3   : > { %v1205_v27 = vadd.f32 %v2261_v35, %v1204_v19 }
 0x2e4   : > { %v1136_v58 = vpop.f32.mrf.mxu2 }
 0x2e5   : > { %v1764_v60 = vpop.eup %1763  ;;  %v1137_v61 = vadd.f32 %v2261_v35, %v1136_v58 }
 0x2e6   : > { %v1766_v62 = vpop.eup %1765  ;;  %1313 = vst [vmem:[%s2271_s18 + $0xf0] sm:$0xff] %v1764_v60 }
 0x2e7   : > { %v1768_v63 = vpop.eup %1767  ;;  %1769 = vtanh.f32 %v1137_v61  ;;  %1335 = vst [vmem:[%s2271_s18 + $0x1a0] sm:$0xff] %v1766_v62 }
 0x2e8   : > { %1336 = vst [vmem:[%s2271_s18 + $0x1a8] sm:$0xff] %v1768_v63 }
 0x2ea   : > { %v1206_v25 = vpop.f32.mrf.mxu3 }
 0x2eb   : > { %v1207_v28 = vadd.f32 %v2261_v35, %v1206_v25 }
 0x2ec   : > { %v1139_v0 = vpop.f32.mrf.mxu2 }
 0x2ed   : > { %v1770_v2 = vpop.eup %1769  ;;  %v1140_v3 = vadd.f32 %v2261_v35, %v1139_v0 }
 0x2ee   : > { %1314 = vst [vmem:[%s2271_s18 + $0xf8] sm:$0xff] %v1770_v2 }
 0x2ef   : > { %1771 = vtanh.f32 %v1140_v3 }
 0x2f0   : > { %1773 = vtanh.f32 %v1195_v4 }
 0x2f1   : > { %1775 = vtanh.f32 %v1197_v5 }
 0x2f4   : > { %v1141_v6 = vpop.f32.mrf.mxu2 }
 0x2f5   : > { %v1772_v8 = vpop.eup %1771  ;;  %v1142_v9 = vadd.f32 %v2261_v35, %v1141_v6 }
 0x2f6   : > { %v1774_v10 = vpop.eup %1773  ;;  %1315 = vst [vmem:[%s2271_s18 + $0x100] sm:$0xff] %v1772_v8 }
 0x2f7   : > { %v1776_v11 = vpop.eup %1775  ;;  %1777 = vtanh.f32 %v1142_v9  ;;  %1337 = vst [vmem:[%s2271_s18 + $0x1b0] sm:$0xff] %v1774_v10 }
 0x2f8   : > { %1338 = vst [vmem:[%s2271_s18 + $0x1b8] sm:$0xff] %v1776_v11 }
 0x2fc   : > { %v1144_v12 = vpop.f32.mrf.mxu2 }
 0x2fd   : > { %v1778_v14 = vpop.eup %1777  ;;  %v1145_v15 = vadd.f32 %v2261_v35, %v1144_v12 }
 0x2fe   : > { %1316 = vst [vmem:[%s2271_s18 + $0x108] sm:$0xff] %v1778_v14 }
 0x2ff   : > { %1779 = vtanh.f32 %v1145_v15 }
 0x300   : > { %1781 = vtanh.f32 %v1200_v16 }
 0x301   : > { %1783 = vtanh.f32 %v1202_v17 }
 0x304   : > { %v1146_v18 = vpop.f32.mrf.mxu2 }
 0x305   : > { %v1780_v44 = vpop.eup %1779  ;;  %v1147_v20 = vadd.f32 %v2261_v35, %v1146_v18 }
 0x306   : > { %v1782_v22 = vpop.eup %1781  ;;  %1317 = vst [vmem:[%s2271_s18 + $0x110] sm:$0xff] %v1780_v44 }
 0x307   : > { %v1784_v23 = vpop.eup %1783  ;;  %1785 = vtanh.f32 %v1147_v20  ;;  %1339 = vst [vmem:[%s2271_s18 + $0x1c0] sm:$0xff] %v1782_v22 }
 0x308   : > { %1340 = vst [vmem:[%s2271_s18 + $0x1c8] sm:$0xff] %v1784_v23 }
 0x30c   : > { %v1149_v24 = vpop.f32.mrf.mxu2  ;;  %v1209_v30 = vpop.f32.mrf.mxu3 }
 0x30d   : > { %v1786_v33 = vpop.eup %1785  ;;  %v1150_v26 = vadd.f32 %v2261_v35, %v1149_v24  ;;  %v1210_v41 = vadd.f32 %v2261_v35, %v1209_v30 }
 0x30e   : > { %1318 = vst [vmem:[%s2271_s18 + $0x118] sm:$0xff] %v1786_v33 }
 0x30f   : > { %1787 = vtanh.f32 %v1150_v26 }
 0x310   : > { %1789 = vtanh.f32 %v1205_v27 }
 0x311   : > { %1791 = vtanh.f32 %v1207_v28 }
 0x314   : > { %v1151_v29 = vpop.f32.mrf.mxu2  ;;  %v1211_v38 = vpop.f32.mrf.mxu3 }
 0x315   : > { %v1788_v31 = vpop.eup %1787  ;;  %v1152_v32 = vadd.f32 %v2261_v35, %v1151_v29  ;;  %v1212_v42 = vadd.f32 %v2261_v35, %v1211_v38 }
 0x316   : > { %v1790_v34 = vpop.eup %1789  ;;  %1319 = vst [vmem:[%s2271_s18 + $0x120] sm:$0xff] %v1788_v31 }
 0x317   : > { %v1792_v36 = vpop.eup %1791  ;;  %1793 = vtanh.f32 %v1152_v32  ;;  %1341 = vst [vmem:[%s2271_s18 + $0x1d0] sm:$0xff] %v1790_v34 }
 0x318   : > { %1342 = vst [vmem:[%s2271_s18 + $0x1d8] sm:$0xff] %v1792_v36 }
 0x31c   : > { %v1154_v37 = vpop.f32.mrf.mxu2  ;;  %v1214_v45 = vpop.f32.mrf.mxu3 }
 0x31d   : > { %v1794_v39 = vpop.eup %1793  ;;  %v1155_v40 = vadd.f32 %v2261_v35, %v1154_v37  ;;  %v1215_v54 = vadd.f32 %v1825_v47, %v1214_v45 }
 0x31e   : > { %1320 = vst [vmem:[%s2271_s18 + $0x128] sm:$0xff] %v1794_v39 }
 0x31f   : > { %1795 = vtanh.f32 %v1155_v40 }
 0x320   : > { %1797 = vtanh.f32 %v1210_v41 }
 0x321   : > { %1799 = vtanh.f32 %v1212_v42 }
 0x324   : > { %v1156_v43 = vpop.f32.mrf.mxu2  ;;  %v1216_v52 = vpop.f32.mrf.mxu3 }
 0x325   : > { %v1796_v46 = vpop.eup %1795  ;;  %v1157_v48 = vadd.f32 %v1825_v47, %v1156_v43  ;;  %v1217_v21 = vadd.f32 %v1825_v47, %v1216_v52 }
 0x326   : > { %v1798_v49 = vpop.eup %1797  ;;  %1321 = vst [vmem:[%s2271_s18 + $0x130] sm:$0xff] %v1796_v46 }
 0x327   : > { %v1800_v50 = vpop.eup %1799  ;;  %1801 = vtanh.f32 %v1157_v48  ;;  %1343 = vst [vmem:[%s2271_s18 + $0x1e0] sm:$0xff] %v1798_v49 }
 0x328   : > { %1344 = vst [vmem:[%s2271_s18 + $0x1e8] sm:$0xff] %v1800_v50 }
 0x32c   : > { %v1159_v51 = vpop.f32.mrf.mxu2 }
 0x32d   : > { %v1802_v35 = vpop.eup %1801  ;;  %v1160_v53 = vadd.f32 %v1825_v47, %v1159_v51 }
 0x32e   : > { %1322 = vst [vmem:[%s2271_s18 + $0x138] sm:$0xff] %v1802_v35 }
 0x32f   : > { %1803 = vtanh.f32 %v1160_v53 }
 0x330   : > { %1805 = vtanh.f32 %v1215_v54 }
 0x331   : > { %1807 = vtanh.f32 %v1217_v21 }
 0x334   : > { %v1161_v55 = vpop.f32.mrf.mxu2 }
 0x335   : > { %v1804_v56 = vpop.eup %1803  ;;  %v1162_v57 = vadd.f32 %v1825_v47, %v1161_v55 }
 0x336   : > { %v1806_v58 = vpop.eup %1805  ;;  %1323 = vst [vmem:[%s2271_s18 + $0x140] sm:$0xff] %v1804_v56 }
 0x337   : > { %v1808_v59 = vpop.eup %1807  ;;  %1809 = vtanh.f32 %v1162_v57  ;;  %1345 = vst [vmem:[%s2271_s18 + $0x1f0] sm:$0xff] %v1806_v58 }
 0x338   : > { %1346 = vst [vmem:[%s2271_s18 + $0x1f8] sm:$0xff] %v1808_v59 }
 0x33c   : > { %v1164_v60 = vpop.f32.mrf.mxu2 }
 0x33d   : > { %v1810_v61 = vpop.eup %1809  ;;  %v1165_v62 = vadd.f32 %v1825_v47, %v1164_v60 }
 0x33e   : > { %1324 = vst [vmem:[%s2271_s18 + $0x148] sm:$0xff] %v1810_v61 }
 0x33f   : > { %1811 = vtanh.f32 %v1165_v62 }
 0x344   : > { %v1166_v63 = vpop.f32.mrf.mxu2 }
 0x345   : > { %v1812_v0 = vpop.eup %1811  ;;  %v1167_v1 = vadd.f32 %v1825_v47, %v1166_v63 }
 0x346   : > { %1325 = vst [vmem:[%s2271_s18 + $0x150] sm:$0xff] %v1812_v0 }
 0x347   : > { %1813 = vtanh.f32 %v1167_v1 }
 0x34c   : > { %v1169_v2 = vpop.f32.mrf.mxu2 }
 0x34d   : > { %v1814_v3 = vpop.eup %1813  ;;  %v1170_v4 = vadd.f32 %v1825_v47, %v1169_v2 }
 0x34e   : > { %1326 = vst [vmem:[%s2271_s18 + $0x158] sm:$0xff] %v1814_v3 }
 0x34f   : > { %1815 = vtanh.f32 %v1170_v4 }
 0x354   : > { %v1171_v5 = vpop.f32.mrf.mxu2 }
 0x355   : > { %v1816_v6 = vpop.eup %1815  ;;  %v1172_v7 = vadd.f32 %v1825_v47, %v1171_v5 }
 0x356   : > { %1327 = vst [vmem:[%s2271_s18 + $0x160] sm:$0xff] %v1816_v6 }
 0x357   : > { %1817 = vtanh.f32 %v1172_v7 }
 0x35c   : > { %v1174_v8 = vpop.f32.mrf.mxu2 }
 0x35d   : > { %v1818_v9 = vpop.eup %1817  ;;  %v1175_v10 = vadd.f32 %v1825_v47, %v1174_v8 }
 0x35e   : > { %1328 = vst [vmem:[%s2271_s18 + $0x168] sm:$0xff] %v1818_v9 }
 0x35f   : > { %1819 = vtanh.f32 %v1175_v10 }
 0x364   : > { %v1176_v11 = vpop.f32.mrf.mxu2 }
 0x365   : > { %v1820_v12 = vpop.eup %1819  ;;  %v1177_v13 = vadd.f32 %v1825_v47, %v1176_v11 }
 0x366   : > { %1329 = vst [vmem:[%s2271_s18 + $0x170] sm:$0xff] %v1820_v12 }
 0x367   : > { %1821 = vtanh.f32 %v1177_v13 }
 0x36d   : > { %v1822_v14 = vpop.eup %1821 }
 0x36e   : > { %1330 = vst [vmem:[%s2271_s18 + $0x178] sm:$0xff] %v1822_v14 }
 0x36f   : > { %1943 = shalt.err (!%p1940_p10)
}
 0x370   : > { %s1994_s22 = smov 128   ;;  %s1995_s24 = smov 8  }
 0x371   : > { %1629 = dma.vmem_to_hbm [thread:$0]  (%p2082_p3), %s1361_s29, 8192, %s1363_s4, %s1348_s5, %s1994_s22, %s1994_s22, %s1995_s24  }
 0x372 PF: > { %s1377_s25 = sand.u32 1, %s1974_s12   ;;  %p2488_p12 = scmp.ge.s32.totalorder %s1986_s15, 2 }
 0x373   : > { %s1378_s30 = scalar_lea.sflag [#allocation4], %s1377_s25 }
 0x374   : > { %p1643_p13 = pnand %p2488_p12, %p2051_p6 }
 0x376   : > { %p1644_p0 = pneg %p1643_p13 }
 0x378   : > { %1969 = dma.done.wait (%p1644_p0), %s1378_s30, 8192  }
 0x379   : > { %1971 = vsyncadd (%p1644_p0), %s1378_s30, 4294959104  ;;  %p17_p5 = scmp.ge.s32.totalorder %s2072_s6, 4   ;;  %s2489_s12 = smov %s1978_s13 }
 0x37a   : > { %s2490_s13 = smov %s1982_s14  ;;  %s2491_s14 = smov %s2088_s10 }
 0x37b   : > { %s2492_s15 = smov %s2072_s6  ;;  %19 = sbr.rel (!%p17_p5) target bundleno = 6 (0x6), region = 87 }
 0x380   :  { %1384 = vsyncpa [#allocation3], 1 }
 0x381   :  { %1386 = vsyncpa [#allocation3 + $0x1], 1 }
 0x382   :  { %1387 = vsyncpa [#allocation6], 1 }
 0x383   :  { %1388 = vsyncpa [#allocation4], 1 }
 0x384   :  { %1390 = vsyncpa [#allocation4 + $0x1], 1 }

</bundles_post_ra>
